<compile_context>
chip_gen: v7x
topology: tpu7x:2x2x1
jax: 0.10.0
libtpu: 0.0.40
codegen_flags: <defaults>
</compile_context>

<pallas_src>
import jax
import jax.numpy as jnp
from jax.experimental import pallas as pl
from jax.experimental.pallas import tpu as pltpu


def _pointnetlk_kernel(src_ref, tgt_ref, rT_ref, t_ref,
                       w1_ref, b1_ref, w2_ref, b2_ref, w3_ref, b3_ref,
                       w4_ref, b4_ref, w5_ref, b5_ref,
                       ts_ref, err_ref, acc_ref):
    """One grid step == Bblk clouds x NT points (src + tgt fused)."""
    p = pl.program_id(1)
    last_p = pl.num_programs(1) - 1
    bf16 = jnp.bfloat16

    src = src_ref[...]                       # (Bblk, NT, 3) f32
    tgt = tgt_ref[...]                       # (Bblk, NT, 3) f32
    rT = rT_ref[...]                         # (Bblk, 3, 3)  = R^T
    tv = t_ref[...]                          # (Bblk, 1, 3)

    # apply_transform on the VPU: xs = src @ R^T + t   (K=3 -> skip the MXU)
    xs = (src[:, :, 0:1] * rT[:, 0:1, :]
          + src[:, :, 1:2] * rT[:, 1:2, :]
          + src[:, :, 2:3] * rT[:, 2:3, :]
          + tv)                              # (Bblk, NT, 3)
    ts_ref[...] = xs

    bblk, nt, _ = src.shape
    # Fused slab: first Bblk*NT rows = transformed source, last = target.
    pts = jnp.concatenate([xs.reshape(bblk * nt, 3),
                           tgt.reshape(bblk * nt, 3)], axis=0)  # (2*Bblk*NT, 3)

    # mlp1 (pointwise convs, folded BN, ReLU); bf16 operands, f32 accumulate.
    h = jnp.dot(pts.astype(bf16), w1_ref[...],
                preferred_element_type=jnp.float32) + b1_ref[...]
    h = jnp.maximum(h, 0.0)                  # (2*Bblk*NT, 64)
    h = jnp.dot(h.astype(bf16), w2_ref[...],
                preferred_element_type=jnp.float32) + b2_ref[...]
    h = jnp.maximum(h, 0.0)                  # (2*Bblk*NT, 128)
    h = jnp.dot(h.astype(bf16), w3_ref[...],
                preferred_element_type=jnp.float32) + b3_ref[...]
    h = jnp.maximum(h, 0.0)                  # (2*Bblk*NT, F)

    feat = h.shape[-1]
    # Segmented max-pool: per cloud, over this point tile only.
    tile_max = jnp.max(h.reshape(2 * bblk, nt, feat), axis=1)   # (2*Bblk, F)

    @pl.when(p == 0)
    def _init():
        acc_ref[...] = jnp.full(acc_ref.shape, -jnp.inf, dtype=acc_ref.dtype)

    acc_ref[...] = jnp.maximum(acc_ref[...], tile_max)

    @pl.when(p == last_p)
    def _finalize():
        g = acc_ref[...]                                         # (2*Bblk, F)
        g = jnp.dot(g.astype(bf16), w4_ref[...],
                    preferred_element_type=jnp.float32) + b4_ref[...]
        g = jnp.maximum(g, 0.0)
        g = jnp.dot(g.astype(bf16), w5_ref[...],
                    preferred_element_type=jnp.float32) + b5_ref[...]
        err_ref[...] = (g[:bblk] - g[bblk:]).reshape(bblk, 1, feat)


def _pick_point_tile(n):
    for t in (1024, 512, 256, 128):
        if n % t == 0:
            return t
    return n


def pointnetlk_forward(source, target, T, params, *, batch_block=1,
                       point_tile=None):
    """source, target: (B, N, 3) f32; T: (B, 4, 4) f32 -> (ts, err)."""
    B, N, _ = source.shape
    feat = params["w5"].shape[1]
    bblk = batch_block
    nt = point_tile if point_tile is not None else _pick_point_tile(N)
    assert B % bblk == 0 and N % nt == 0

    # Glue: decompose the homogeneous transform into R^T and t.
    Rt = jnp.transpose(T[:, :3, :3], (0, 2, 1)).astype(jnp.float32)   # (B,3,3)
    tvec = T[:, :3, 3][:, None, :].astype(jnp.float32)                # (B,1,3)

    # bf16 matmul operands (MXU fast path); biases stay f32 so the VPU-side
    # elementwise work never runs in bf16 (matters on v5e).
    weight_names = ("w1", "b1", "w2", "b2", "w3", "b3", "w4", "b4", "w5", "b5")
    weights = [params[k].astype(jnp.bfloat16) if k[0] == "w"
               else params[k].astype(jnp.float32) for k in weight_names]

    in_specs = [
        pl.BlockSpec((bblk, nt, 3), lambda b, p: (b, p, 0)),   # source
        pl.BlockSpec((bblk, nt, 3), lambda b, p: (b, p, 0)),   # target
        pl.BlockSpec((bblk, 3, 3), lambda b, p: (b, 0, 0)),    # R^T
        pl.BlockSpec((bblk, 1, 3), lambda b, p: (b, 0, 0)),    # t
    ] + [pl.BlockSpec(w.shape, lambda b, p: (0, 0)) for w in weights]

    out_shape = (jax.ShapeDtypeStruct((B, N, 3), jnp.float32),
                 jax.ShapeDtypeStruct((B, 1, feat), jnp.float32))
    out_specs = (pl.BlockSpec((bblk, nt, 3), lambda b, p: (b, p, 0)),
                 pl.BlockSpec((bblk, 1, feat), lambda b, p: (b, 0, 0)))

    # Advisory cost estimate so XLA schedules surrounding ops around the call.
    mm_flops = (2 * (2 * B * N) * (3 * 64 + 64 * 128 + 128 * feat)
                + 2 * (2 * B) * (2 * feat * feat) + 18 * B * N)
    w_bytes = (2 * (3 * 64 + 64 * 128 + 128 * feat + 2 * feat * feat)
               + 4 * (64 + 128 + 3 * feat))
    io_bytes = 4 * (3 * B * N * 3 + B * 12 + B * feat)
    cost = pl.CostEstimate(flops=int(mm_flops), transcendentals=0,
                           bytes_accessed=int(w_bytes + io_bytes))

    ts, err = pl.pallas_call(
        _pointnetlk_kernel,
        out_shape=out_shape,
        grid_spec=pltpu.PrefetchScalarGridSpec(
            num_scalar_prefetch=0,
            grid=(B // bblk, N // nt),
            in_specs=in_specs,
            out_specs=out_specs,
            scratch_shapes=[pltpu.VMEM((2 * bblk, feat), jnp.float32)],
        ),
        compiler_params=pltpu.CompilerParams(
            dimension_semantics=("parallel", "arbitrary"),
            vmem_limit_bytes=48 * 1024 * 1024,   # fits v7x's 64 MiB physical
        ),
        cost_estimate=cost,
    )(source, target, Rt, tvec, *weights)

    return ts, err[:, 0, :]


def init_params(key, feature_dim=256):
    """Deterministic synthetic weights; eval-mode BN folded into W, b."""
    dims = [(3, 64), (64, 128), (128, feature_dim),
            (feature_dim, feature_dim), (feature_dim, feature_dim)]
    keys = jax.random.split(key, 20)
    params, ki, eps = {}, 0, 1e-5
    for i, (din, dout) in enumerate(dims, start=1):
        w = jax.random.normal(keys[ki], (din, dout), jnp.float32) / jnp.sqrt(din)
        ki += 1
        b = 0.01 * jax.random.normal(keys[ki], (1, dout), jnp.float32)
        ki += 1
        if i <= 4:  # layers followed by BatchNorm (mlp1 x3, mlp2 first Linear)
            gamma = 1.0 + 0.05 * jax.random.normal(keys[ki], (dout,), jnp.float32)
            ki += 1
            beta = 0.05 * jax.random.normal(keys[ki], (dout,), jnp.float32)
            ki += 1
            running_mean = jnp.zeros((dout,), jnp.float32)
            running_var = jnp.ones((dout,), jnp.float32)
            scale = gamma / jnp.sqrt(running_var + eps)
            w = w * scale[None, :]
            b = (b - running_mean[None, :]) * scale[None, :] + beta[None, :]
        params[f"w{i}"] = w
        params[f"b{i}"] = b
    return params


def reference_forward(source, target, T, params):
    """Plain-JAX reference mirroring the PyTorch module (eval-mode BN), with
    the same bf16-operand / f32-accumulate matmul convention as the kernel."""
    Rt = jnp.transpose(T[:, :3, :3], (0, 2, 1))
    tv = T[:, :3, 3][:, None, :]
    ts = (source[:, :, 0:1] * Rt[:, None, 0, :]
          + source[:, :, 1:2] * Rt[:, None, 1, :]
          + source[:, :, 2:3] * Rt[:, None, 2, :]
          + tv)

    bf16 = jnp.bfloat16

    def mm(x, w):
        return jnp.dot(x.astype(bf16), w.astype(bf16),
                       preferred_element_type=jnp.float32)

    def feat(x):
        h = jnp.maximum(mm(x, params["w1"]) + params["b1"], 0.0)
        h = jnp.maximum(mm(h, params["w2"]) + params["b2"], 0.0)
        h = jnp.maximum(mm(h, params["w3"]) + params["b3"], 0.0)
        g = jnp.max(h, axis=1)
        g = jnp.maximum(mm(g, params["w4"]) + params["b4"], 0.0)
        return mm(g, params["w5"]) + params["b5"]

    return ts, feat(ts) - feat(target)


if __name__ == "__main__":
    B, N, FEATURE_DIM = 2, 64, 256

    key = jax.random.PRNGKey(0)
    k_src, k_tgt, k_ang, k_trn, k_par = jax.random.split(key, 5)

    source = jax.random.normal(k_src, (B, N, 3), jnp.float32)
    target = jax.random.normal(k_tgt, (B, N, 3), jnp.float32)

    # Build a rigid-ish transform: rotation about z + translation.
    ang = jax.random.uniform(k_ang, (B,), minval=-0.5, maxval=0.5)
    c, s, z, o = jnp.cos(ang), jnp.sin(ang), jnp.zeros((B,)), jnp.ones((B,))
    R = jnp.stack([jnp.stack([c, -s, z], -1),
                   jnp.stack([s, c, z], -1),
                   jnp.stack([z, z, o], -1)], -2)                # (B, 3, 3)
    trans = 0.1 * jax.random.normal(k_trn, (B, 3), jnp.float32)
    T = (jnp.zeros((B, 4, 4), jnp.float32)
         .at[:, :3, :3].set(R)
         .at[:, :3, 3].set(trans)
         .at[:, 3, 3].set(1.0))

    params = init_params(k_par, FEATURE_DIM)

    ts, err = pointnetlk_forward(source, target, T, params)
    jax.block_until_ready((ts, err))

    ts_ref, err_ref = reference_forward(source, target, T, params)
    assert ts.shape == (B, N, 3) and err.shape == (B, FEATURE_DIM)
    assert jnp.allclose(ts, ts_ref, atol=1e-4, rtol=1e-4)
    assert jnp.allclose(err, err_ref, atol=2e-3, rtol=2e-3)

    print("KERNEL_OK")
</pallas_src>

<mosaic_0001>
module attributes {stable_mosaic.version = 11 : i64} {
  func.func @_pointnetlk_kernel(%arg0: i32, %arg1: i32, %arg2: memref<1x64x3xf32, #tpu.memory_space<vmem>>, %arg3: memref<1x64x3xf32, #tpu.memory_space<vmem>>, %arg4: memref<1x3x3xf32, #tpu.memory_space<vmem>>, %arg5: memref<1x1x3xf32, #tpu.memory_space<vmem>>, %arg6: memref<3x64xbf16, #tpu.memory_space<vmem>>, %arg7: memref<1x64xf32, #tpu.memory_space<vmem>>, %arg8: memref<64x128xbf16, #tpu.memory_space<vmem>>, %arg9: memref<1x128xf32, #tpu.memory_space<vmem>>, %arg10: memref<128x256xbf16, #tpu.memory_space<vmem>>, %arg11: memref<1x256xf32, #tpu.memory_space<vmem>>, %arg12: memref<256x256xbf16, #tpu.memory_space<vmem>>, %arg13: memref<1x256xf32, #tpu.memory_space<vmem>>, %arg14: memref<256x256xbf16, #tpu.memory_space<vmem>>, %arg15: memref<1x256xf32, #tpu.memory_space<vmem>>, %arg16: memref<1x64x3xf32, #tpu.memory_space<vmem>>, %arg17: memref<1x1x256xf32, #tpu.memory_space<vmem>>, %arg18: memref<2x256xf32, #tpu.memory_space<vmem>>) attributes {dimension_semantics = [#tpu.dimension_semantics<parallel>, #tpu.dimension_semantics<arbitrary>], iteration_bounds = array<i64: 2, 1>, scalar_prefetch = 0 : i64, scratch_operands = 1 : i64, tpu.core_type = #tpu.core_type<tc>, window_params = [{transform_indices = @transform_0, window_bounds = array<i64: 1, 64, 3>}, {transform_indices = @transform_1, window_bounds = array<i64: 1, 64, 3>}, {transform_indices = @transform_2, window_bounds = array<i64: 1, 3, 3>}, {transform_indices = @transform_3, window_bounds = array<i64: 1, 1, 3>}, {pipeline_mode = #tpu.pipeline_mode<synchronous>, transform_indices = @transform_4, window_bounds = array<i64: 3, 64>}, {pipeline_mode = #tpu.pipeline_mode<synchronous>, transform_indices = @transform_5, window_bounds = array<i64: 1, 64>}, {pipeline_mode = #tpu.pipeline_mode<synchronous>, transform_indices = @transform_6, window_bounds = array<i64: 64, 128>}, {pipeline_mode = #tpu.pipeline_mode<synchronous>, transform_indices = @transform_7, window_bounds = array<i64: 1, 128>}, {pipeline_mode = #tpu.pipeline_mode<synchronous>, transform_indices = @transform_8, window_bounds = array<i64: 128, 256>}, {pipeline_mode = #tpu.pipeline_mode<synchronous>, transform_indices = @transform_9, window_bounds = array<i64: 1, 256>}, {pipeline_mode = #tpu.pipeline_mode<synchronous>, transform_indices = @transform_10, window_bounds = array<i64: 256, 256>}, {pipeline_mode = #tpu.pipeline_mode<synchronous>, transform_indices = @transform_11, window_bounds = array<i64: 1, 256>}, {pipeline_mode = #tpu.pipeline_mode<synchronous>, transform_indices = @transform_12, window_bounds = array<i64: 256, 256>}, {pipeline_mode = #tpu.pipeline_mode<synchronous>, transform_indices = @transform_13, window_bounds = array<i64: 1, 256>}, {transform_indices = @transform_14, window_bounds = array<i64: 1, 64, 3>}, {transform_indices = @transform_15, window_bounds = array<i64: 1, 1, 256>}]} {
    %c0 = arith.constant 0 : index
    %c0_0 = arith.constant 0 : index
    %c0_1 = arith.constant 0 : index
    %0 = vector.load %arg2[%c0, %c0_0, %c0_1] : memref<1x64x3xf32, #tpu.memory_space<vmem>>, vector<1x64x3xf32>
    %c0_2 = arith.constant 0 : index
    %c0_3 = arith.constant 0 : index
    %c0_4 = arith.constant 0 : index
    %1 = vector.load %arg3[%c0_2, %c0_3, %c0_4] : memref<1x64x3xf32, #tpu.memory_space<vmem>>, vector<1x64x3xf32>
    %c0_5 = arith.constant 0 : index
    %c0_6 = arith.constant 0 : index
    %c0_7 = arith.constant 0 : index
    %2 = vector.load %arg4[%c0_5, %c0_6, %c0_7] : memref<1x3x3xf32, #tpu.memory_space<vmem>>, vector<1x3x3xf32>
    %c0_8 = arith.constant 0 : index
    %c0_9 = arith.constant 0 : index
    %c0_10 = arith.constant 0 : index
    %3 = vector.load %arg5[%c0_8, %c0_9, %c0_10] : memref<1x1x3xf32, #tpu.memory_space<vmem>>, vector<1x1x3xf32>
    %4 = vector.extract_strided_slice %0 {offsets = [0, 0, 0], sizes = [1, 64, 1], strides = [1, 1, 1]} : vector<1x64x3xf32> to vector<1x64x1xf32>
    %5 = vector.extract_strided_slice %2 {offsets = [0, 0, 0], sizes = [1, 1, 3], strides = [1, 1, 1]} : vector<1x3x3xf32> to vector<1x1x3xf32>
    %6 = vector.broadcast %4 : vector<1x64x1xf32> to vector<1x64x3xf32>
    %7 = vector.broadcast %5 : vector<1x1x3xf32> to vector<1x64x3xf32>
    %8 = arith.mulf %6, %7 : vector<1x64x3xf32>
    %9 = vector.extract_strided_slice %0 {offsets = [0, 0, 1], sizes = [1, 64, 1], strides = [1, 1, 1]} : vector<1x64x3xf32> to vector<1x64x1xf32>
    %10 = vector.extract_strided_slice %2 {offsets = [0, 1, 0], sizes = [1, 1, 3], strides = [1, 1, 1]} : vector<1x3x3xf32> to vector<1x1x3xf32>
    %11 = vector.broadcast %9 : vector<1x64x1xf32> to vector<1x64x3xf32>
    %12 = vector.broadcast %10 : vector<1x1x3xf32> to vector<1x64x3xf32>
    %13 = arith.mulf %11, %12 : vector<1x64x3xf32>
    %14 = arith.addf %8, %13 : vector<1x64x3xf32>
    %15 = vector.extract_strided_slice %0 {offsets = [0, 0, 2], sizes = [1, 64, 1], strides = [1, 1, 1]} : vector<1x64x3xf32> to vector<1x64x1xf32>
    %16 = vector.extract_strided_slice %2 {offsets = [0, 2, 0], sizes = [1, 1, 3], strides = [1, 1, 1]} : vector<1x3x3xf32> to vector<1x1x3xf32>
    %17 = vector.broadcast %15 : vector<1x64x1xf32> to vector<1x64x3xf32>
    %18 = vector.broadcast %16 : vector<1x1x3xf32> to vector<1x64x3xf32>
    %19 = arith.mulf %17, %18 : vector<1x64x3xf32>
    %20 = arith.addf %14, %19 : vector<1x64x3xf32>
    %21 = vector.broadcast %3 : vector<1x1x3xf32> to vector<1x64x3xf32>
    %22 = arith.addf %20, %21 : vector<1x64x3xf32>
    %c0_11 = arith.constant 0 : index
    %c0_12 = arith.constant 0 : index
    %c0_13 = arith.constant 0 : index
    %23 = vector.load %arg16[%c0_11, %c0_12, %c0_13] : memref<1x64x3xf32, #tpu.memory_space<vmem>>, vector<1x64x3xf32>
    tpu.vector_store %arg16[%c0_11, %c0_12, %c0_13], %22 {strides = array<i32>} : memref<1x64x3xf32, #tpu.memory_space<vmem>>, vector<1x64x3xf32>,
    %24 = vector.shape_cast %22 : vector<1x64x3xf32> to vector<64x3xf32>
    %25 = vector.shape_cast %1 : vector<1x64x3xf32> to vector<64x3xf32>
    %26 = tpu.concatenate %24, %25 in 0 : vector<64x3xf32>, vector<64x3xf32> -> vector<128x3xf32>
    %27 = arith.truncf %26 : vector<128x3xf32> to vector<128x3xbf16>
    %c0_14 = arith.constant 0 : index
    %c0_15 = arith.constant 0 : index
    %28 = vector.load %arg6[%c0_14, %c0_15] : memref<3x64xbf16, #tpu.memory_space<vmem>>, vector<3x64xbf16>
    %cst = arith.constant dense<0.000000e+00> : vector<128x64xf32>
    %29 = tpu.matmul %27, %28, %cst {dimension_numbers = #tpu.dot_dimension_numbers<[1], [0], [0], [1], [0, 0, 1, 1], [], []>} : vector<128x3xbf16>, vector<3x64xbf16>, vector<128x64xf32> -> vector<128x64xf32>
    %c0_16 = arith.constant 0 : index
    %c0_17 = arith.constant 0 : index
    %30 = vector.load %arg7[%c0_16, %c0_17] : memref<1x64xf32, #tpu.memory_space<vmem>>, vector<1x64xf32>
    %31 = vector.broadcast %30 : vector<1x64xf32> to vector<128x64xf32>
    %32 = arith.addf %29, %31 : vector<128x64xf32>
    %cst_18 = arith.constant 0.000000e+00 : f32
    %33 = vector.broadcast %cst_18 : f32 to vector<128x64xf32>
    %34 = arith.maximumf %32, %33 : vector<128x64xf32>
    %35 = arith.truncf %34 : vector<128x64xf32> to vector<128x64xbf16>
    %c0_19 = arith.constant 0 : index
    %c0_20 = arith.constant 0 : index
    %36 = vector.load %arg8[%c0_19, %c0_20] : memref<64x128xbf16, #tpu.memory_space<vmem>>, vector<64x128xbf16>
    %cst_21 = arith.constant dense<0.000000e+00> : vector<128x128xf32>
    %37 = tpu.matmul %35, %36, %cst_21 {dimension_numbers = #tpu.dot_dimension_numbers<[1], [0], [0], [1], [0, 0, 1, 1], [], []>} : vector<128x64xbf16>, vector<64x128xbf16>, vector<128x128xf32> -> vector<128x128xf32>
    %c0_22 = arith.constant 0 : index
    %c0_23 = arith.constant 0 : index
    %38 = vector.load %arg9[%c0_22, %c0_23] : memref<1x128xf32, #tpu.memory_space<vmem>>, vector<1x128xf32>
    %39 = vector.broadcast %38 : vector<1x128xf32> to vector<128x128xf32>
    %40 = arith.addf %37, %39 : vector<128x128xf32>
    %cst_24 = arith.constant 0.000000e+00 : f32
    %41 = vector.broadcast %cst_24 : f32 to vector<128x128xf32>
    %42 = arith.maximumf %40, %41 : vector<128x128xf32>
    %43 = arith.truncf %42 : vector<128x128xf32> to vector<128x128xbf16>
    %c0_25 = arith.constant 0 : index
    %c0_26 = arith.constant 0 : index
    %44 = vector.load %arg10[%c0_25, %c0_26] : memref<128x256xbf16, #tpu.memory_space<vmem>>, vector<128x256xbf16>
    %cst_27 = arith.constant dense<0.000000e+00> : vector<128x256xf32>
    %45 = tpu.matmul %43, %44, %cst_27 {dimension_numbers = #tpu.dot_dimension_numbers<[1], [0], [0], [1], [0, 0, 1, 1], [], []>} : vector<128x128xbf16>, vector<128x256xbf16>, vector<128x256xf32> -> vector<128x256xf32>
    %c0_28 = arith.constant 0 : index
    %c0_29 = arith.constant 0 : index
    %46 = vector.load %arg11[%c0_28, %c0_29] : memref<1x256xf32, #tpu.memory_space<vmem>>, vector<1x256xf32>
    %47 = vector.broadcast %46 : vector<1x256xf32> to vector<128x256xf32>
    %48 = arith.addf %45, %47 : vector<128x256xf32>
    %cst_30 = arith.constant 0.000000e+00 : f32
    %49 = vector.broadcast %cst_30 : f32 to vector<128x256xf32>
    %50 = arith.maximumf %48, %49 : vector<128x256xf32>
    %51 = vector.shape_cast %50 : vector<128x256xf32> to vector<2x64x256xf32>
    %cst_31 = arith.constant dense<0xFF800000> : vector<2x256xf32>
    %52 = vector.multi_reduction <maximumf>, %51, %cst_31 [1] : vector<2x64x256xf32> to vector<2x256xf32>
    %c0_i32 = arith.constant 0 : i32
    %53 = arith.cmpi eq, %arg1, %c0_i32 : i32
    %54 = arith.extui %53 : i1 to i32
    %c0_i32_32 = arith.constant 0 : i32
    %55 = arith.cmpi ne, %54, %c0_i32_32 : i32
    scf.if %55 {
      %cst_39 = arith.constant 0xFF800000 : f32
      %62 = vector.broadcast %cst_39 : f32 to vector<2x256xf32>
      %c0_40 = arith.constant 0 : index
      %c0_41 = arith.constant 0 : index
      %63 = vector.load %arg18[%c0_40, %c0_41] : memref<2x256xf32, #tpu.memory_space<vmem>>, vector<2x256xf32>
      tpu.vector_store %arg18[%c0_40, %c0_41], %62 {strides = array<i32>} : memref<2x256xf32, #tpu.memory_space<vmem>>, vector<2x256xf32>,
    } else {
    }
    %c0_33 = arith.constant 0 : index
    %c0_34 = arith.constant 0 : index
    %56 = vector.load %arg18[%c0_33, %c0_34] : memref<2x256xf32, #tpu.memory_space<vmem>>, vector<2x256xf32>
    %57 = arith.maximumf %56, %52 : vector<2x256xf32>
    %c0_35 = arith.constant 0 : index
    %c0_36 = arith.constant 0 : index
    %58 = vector.load %arg18[%c0_35, %c0_36] : memref<2x256xf32, #tpu.memory_space<vmem>>, vector<2x256xf32>
    tpu.vector_store %arg18[%c0_35, %c0_36], %57 {strides = array<i32>} : memref<2x256xf32, #tpu.memory_space<vmem>>, vector<2x256xf32>,
    %c0_i32_37 = arith.constant 0 : i32
    %59 = arith.cmpi eq, %arg1, %c0_i32_37 : i32
    %60 = arith.extui %59 : i1 to i32
    %c0_i32_38 = arith.constant 0 : i32
    %61 = arith.cmpi ne, %60, %c0_i32_38 : i32
    scf.if %61 {
      %c0_39 = arith.constant 0 : index
      %c0_40 = arith.constant 0 : index
      %62 = vector.load %arg18[%c0_39, %c0_40] : memref<2x256xf32, #tpu.memory_space<vmem>>, vector<2x256xf32>
      %63 = arith.truncf %62 : vector<2x256xf32> to vector<2x256xbf16>
      %c0_41 = arith.constant 0 : index
      %c0_42 = arith.constant 0 : index
      %64 = vector.load %arg12[%c0_41, %c0_42] : memref<256x256xbf16, #tpu.memory_space<vmem>>, vector<256x256xbf16>
      %cst_43 = arith.constant dense<0.000000e+00> : vector<2x256xf32>
      %65 = tpu.matmul %63, %64, %cst_43 {dimension_numbers = #tpu.dot_dimension_numbers<[1], [0], [0], [1], [0, 0, 1, 1], [], []>} : vector<2x256xbf16>, vector<256x256xbf16>, vector<2x256xf32> -> vector<2x256xf32>
      %c0_44 = arith.constant 0 : index
      %c0_45 = arith.constant 0 : index
      %66 = vector.load %arg13[%c0_44, %c0_45] : memref<1x256xf32, #tpu.memory_space<vmem>>, vector<1x256xf32>
      %67 = vector.broadcast %66 : vector<1x256xf32> to vector<2x256xf32>
      %68 = arith.addf %65, %67 : vector<2x256xf32>
      %cst_46 = arith.constant 0.000000e+00 : f32
      %69 = vector.broadcast %cst_46 : f32 to vector<2x256xf32>
      %70 = arith.maximumf %68, %69 : vector<2x256xf32>
      %71 = arith.truncf %70 : vector<2x256xf32> to vector<2x256xbf16>
      %c0_47 = arith.constant 0 : index
      %c0_48 = arith.constant 0 : index
      %72 = vector.load %arg14[%c0_47, %c0_48] : memref<256x256xbf16, #tpu.memory_space<vmem>>, vector<256x256xbf16>
      %cst_49 = arith.constant dense<0.000000e+00> : vector<2x256xf32>
      %73 = tpu.matmul %71, %72, %cst_49 {dimension_numbers = #tpu.dot_dimension_numbers<[1], [0], [0], [1], [0, 0, 1, 1], [], []>} : vector<2x256xbf16>, vector<256x256xbf16>, vector<2x256xf32> -> vector<2x256xf32>
      %c0_50 = arith.constant 0 : index
      %c0_51 = arith.constant 0 : index
      %74 = vector.load %arg15[%c0_50, %c0_51] : memref<1x256xf32, #tpu.memory_space<vmem>>, vector<1x256xf32>
      %75 = vector.broadcast %74 : vector<1x256xf32> to vector<2x256xf32>
      %76 = arith.addf %73, %75 : vector<2x256xf32>
      %77 = vector.extract_strided_slice %76 {offsets = [0, 0], sizes = [1, 256], strides = [1, 1]} : vector<2x256xf32> to vector<1x256xf32>
      %78 = vector.extract_strided_slice %76 {offsets = [1, 0], sizes = [1, 256], strides = [1, 1]} : vector<2x256xf32> to vector<1x256xf32>
      %79 = arith.subf %77, %78 : vector<1x256xf32>
      %80 = vector.shape_cast %79 : vector<1x256xf32> to vector<1x1x256xf32>
      %c0_52 = arith.constant 0 : index
      %c0_53 = arith.constant 0 : index
      %c0_54 = arith.constant 0 : index
      %81 = vector.load %arg17[%c0_52, %c0_53, %c0_54] : memref<1x1x256xf32, #tpu.memory_space<vmem>>, vector<1x1x256xf32>
      tpu.vector_store %arg17[%c0_52, %c0_53, %c0_54], %80 {strides = array<i32>} : memref<1x1x256xf32, #tpu.memory_space<vmem>>, vector<1x1x256xf32>,
    } else {
    }
    return
  }
  func.func @transform_0(%arg0: i32, %arg1: i32) -> (i32, i32, i32) {
    %c0_i32 = arith.constant 0 : i32
    %c0_i32_0 = arith.constant 0 : i32
    return %arg0, %arg1, %c0_i32 : i32, i32, i32
  }
  func.func @transform_1(%arg0: i32, %arg1: i32) -> (i32, i32, i32) {
    %c0_i32 = arith.constant 0 : i32
    %c0_i32_0 = arith.constant 0 : i32
    return %arg0, %arg1, %c0_i32 : i32, i32, i32
  }
  func.func @transform_2(%arg0: i32, %arg1: i32) -> (i32, i32, i32) {
    %c0_i32 = arith.constant 0 : i32
    %c0_i32_0 = arith.constant 0 : i32
    %c0_i32_1 = arith.constant 0 : i32
    return %arg0, %c0_i32, %c0_i32_0 : i32, i32, i32
  }
  func.func @transform_3(%arg0: i32, %arg1: i32) -> (i32, i32, i32) {
    %c0_i32 = arith.constant 0 : i32
    %c0_i32_0 = arith.constant 0 : i32
    %c0_i32_1 = arith.constant 0 : i32
    return %arg0, %c0_i32, %c0_i32_0 : i32, i32, i32
  }
  func.func @transform_4(%arg0: i32, %arg1: i32) -> (i32, i32) {
    %c0_i32 = arith.constant 0 : i32
    %c0_i32_0 = arith.constant 0 : i32
    %c0_i32_1 = arith.constant 0 : i32
    return %c0_i32, %c0_i32_0 : i32, i32
  }
  func.func @transform_5(%arg0: i32, %arg1: i32) -> (i32, i32) {
    %c0_i32 = arith.constant 0 : i32
    %c0_i32_0 = arith.constant 0 : i32
    %c0_i32_1 = arith.constant 0 : i32
    return %c0_i32, %c0_i32_0 : i32, i32
  }
  func.func @transform_6(%arg0: i32, %arg1: i32) -> (i32, i32) {
    %c0_i32 = arith.constant 0 : i32
    %c0_i32_0 = arith.constant 0 : i32
    %c0_i32_1 = arith.constant 0 : i32
    return %c0_i32, %c0_i32_0 : i32, i32
  }
  func.func @transform_7(%arg0: i32, %arg1: i32) -> (i32, i32) {
    %c0_i32 = arith.constant 0 : i32
    %c0_i32_0 = arith.constant 0 : i32
    %c0_i32_1 = arith.constant 0 : i32
    return %c0_i32, %c0_i32_0 : i32, i32
  }
  func.func @transform_8(%arg0: i32, %arg1: i32) -> (i32, i32) {
    %c0_i32 = arith.constant 0 : i32
    %c0_i32_0 = arith.constant 0 : i32
    %c0_i32_1 = arith.constant 0 : i32
    return %c0_i32, %c0_i32_0 : i32, i32
  }
  func.func @transform_9(%arg0: i32, %arg1: i32) -> (i32, i32) {
    %c0_i32 = arith.constant 0 : i32
    %c0_i32_0 = arith.constant 0 : i32
    %c0_i32_1 = arith.constant 0 : i32
    return %c0_i32, %c0_i32_0 : i32, i32
  }
  func.func @transform_10(%arg0: i32, %arg1: i32) -> (i32, i32) {
    %c0_i32 = arith.constant 0 : i32
    %c0_i32_0 = arith.constant 0 : i32
    %c0_i32_1 = arith.constant 0 : i32
    return %c0_i32, %c0_i32_0 : i32, i32
  }
  func.func @transform_11(%arg0: i32, %arg1: i32) -> (i32, i32) {
    %c0_i32 = arith.constant 0 : i32
    %c0_i32_0 = arith.constant 0 : i32
    %c0_i32_1 = arith.constant 0 : i32
    return %c0_i32, %c0_i32_0 : i32, i32
  }
  func.func @transform_12(%arg0: i32, %arg1: i32) -> (i32, i32) {
    %c0_i32 = arith.constant 0 : i32
    %c0_i32_0 = arith.constant 0 : i32
    %c0_i32_1 = arith.constant 0 : i32
    return %c0_i32, %c0_i32_0 : i32, i32
  }
  func.func @transform_13(%arg0: i32, %arg1: i32) -> (i32, i32) {
    %c0_i32 = arith.constant 0 : i32
    %c0_i32_0 = arith.constant 0 : i32
    %c0_i32_1 = arith.constant 0 : i32
    return %c0_i32, %c0_i32_0 : i32, i32
  }
  func.func @transform_14(%arg0: i32, %arg1: i32) -> (i32, i32, i32) {
    %c0_i32 = arith.constant 0 : i32
    %c0_i32_0 = arith.constant 0 : i32
    return %arg0, %arg1, %c0_i32 : i32, i32, i32
  }
  func.func @transform_15(%arg0: i32, %arg1: i32) -> (i32, i32, i32) {
    %c0_i32 = arith.constant 0 : i32
    %c0_i32_0 = arith.constant 0 : i32
    %c0_i32_1 = arith.constant 0 : i32
    return %arg0, %c0_i32, %c0_i32_0 : i32, i32, i32
  }
}

</mosaic_0001>

<bundles_post_ra>
// kernel: tpu_custom_call.1
= control target key start
LH: loop header
LB: loop body
LE: loop exit
PB: predicated region body
PF: predicated region fallthrough
CT: control target
= control target key end

     0   :  { %s3425_s0 = inlined_call_operand.vmem [shape: f32[2,64,3], index: 0, kind: input, shape index: {}]   ;;  %s3426_s1 = inlined_call_operand.vmem [shape: f32[2,64,3], index: 1, kind: input, shape index: {}]   ;;  %s3427_s2 = inlined_call_operand.vmem [shape: f32[2,3,3], index: 2, kind: input, shape index: {}]   ;;  %s3428_s3 = inlined_call_operand.vmem [shape: f32[2,1,3], index: 3, kind: input, shape index: {}]   ;;  %s3429_s4 = inlined_call_operand.vmem [shape: bf16[3,64], index: 4, kind: input, shape index: {}]   ;;  %s3430_s5 = inlined_call_operand.vmem [shape: f32[1,64], index: 5, kind: input, shape index: {}]   ;;  %s3431_s6 = inlined_call_operand.vmem [shape: bf16[64,128], index: 6, kind: input, shape index: {}]   ;;  %s3432_s7 = inlined_call_operand.vmem [shape: f32[1,128], index: 7, kind: input, shape index: {}]   ;;  %s3433_s8 = inlined_call_operand.hbm [shape: bf16[128,256], index: 8, kind: input, shape index: {}]   ;;  %s3434_s9 = inlined_call_operand.vmem [shape: f32[1,256], index: 9, kind: input, shape index: {}]   ;;  %s3435_s10 = inlined_call_operand.vmem [shape: bf16[256,256], index: 10, kind: input, shape index: {}]   ;;  %s3436_s11 = inlined_call_operand.vmem [shape: f32[1,256], index: 11, kind: input, shape index: {}]   ;;  %s3437_s12 = inlined_call_operand.hbm [shape: bf16[256,256], index: 12, kind: input, shape index: {}]   ;;  %s3438_s13 = inlined_call_operand.vmem [shape: f32[1,256], index: 13, kind: input, shape index: {}]   ;;  %s3439_s14 = inlined_call_operand.vmem [shape: f32[2,64,3], index: 14, kind: output, shape index: {0}]   ;;  %s3440_s15 = inlined_call_operand.hbm [shape: f32[2,1,256], index: 15, kind: output, shape index: {1}]  }
   0x1   :  { %3456 = sst [smem:[#allocation21_spill]] %s3438_s13 }
   0x2   :  { %3457 = sst [smem:[#allocation22_spill]] %s3440_s15 }
   0x3   :  { %21 = vsyncpa [#allocation4], 0 }
   0x4   :  { %22 = vsyncpa [#allocation7], 0 }
   0x5   :  { %23 = vsyncpa [#allocation5], 0 }
   0x6   :  { %25 = vsyncpa [#allocation5 + $0x1], 0  ;;  %s2933_s18 = smov 0   ;;  %s2935_s19 = smov 0  }
   0x7   :  { %s2937_s20 = smov 0   ;;  %s2939_s21 = smov 0  }
   0x8   :  { %s2941_s22 = smov 0   ;;  %s2943_s23 = smov 0  }
   0x9 LB: > { %3458 = sst [smem:[#allocation12_spill]] %s2819_s18  ;;  %s2281_s24 = sadd.s32 4294967295, %s2839_s23   ;;  %s2839_s23 = sphi %s2943_s23, %s31_s23   ;;  %s2835_s22 = sphi %s2941_s22, %s3487_s22   ;;  %s2831_s21 = sphi %s2939_s21, %s3486_s21   ;;  %s2827_s20 = sphi %s2937_s20, %s3485_s20   ;;  %s2823_s19 = sphi %s2935_s19, %s3484_s19   ;;  %s2819_s18 = sphi %s2933_s18, %s3483_s18  }
   0xa   : > { %3459 = sst [smem:[#allocation13_spill]] %s2823_s19  ;;  %s2282_s25 = sadd.s32 4294967294, %s2839_s23  }
   0xb   : > { %3460 = sst [smem:[#allocation14_spill]] %s2827_s20  ;;  %s43_s26 = sadd.s32 1, %s2835_s22 }
   0xc   : > { %3461 = sst [smem:[#allocation15_spill]] %s2835_s22  ;;  %s396_s27 = sadd.s32 1, %s2827_s20 }
   0xd   : > { %3462 = sst [smem:[#allocation16_spill]] %s2839_s23  ;;  %p45_p0 = scmp.ge.s32.totalorder %s43_s26, 2 }
   0xe   : > { %p406_p1 = scmp.ne.s32.totalorder %s2827_s20, %s2823_s19  ;;  %p407_p2 = scmp.eq.s32.totalorder %s2281_s24, 1 }
   0xf   : > { %p412_p3 = scmp.ne.s32.totalorder %s2823_s19, %s2819_s18  ;;  %s3489_s26 = smov (%p45_p0, %s43_s26), 0 }
  0x10   : > { %3463 = sst [smem:[#allocation17_spill]] %s3489_s26  ;;  %p2973_p4 = por %p407_p2, %p406_p1 }
  0x11   : > { %p413_p5 = scmp.eq.s32.totalorder %s2282_s25, 1  ;;  %s393_s29 = ssub.s32 %s2835_s22, %s3489_s26 }
  0x12   : > { %s3464_s28 = scalar_select %p2973_p4, 1, 0 }
  0x13   : > { %p2283_p6 = scmp.ge.s32.totalorder %s2839_s23, 1  ;;  %p394_p7 = scmp.eq.s32.totalorder %s393_s29, 0 }
  0x14   : > { %3465 = sst [smem:[#allocation18_spill]] %s3464_s28  ;;  %p2980_p8 = por %p413_p5, %p412_p3 }
  0x15   : > { %p420_p9 = scmp.lt.s32.totalorder %s2839_s23, 3  ;;  %p2992_p11 = scmp.eq.s32.totalorder %s2281_s24, 0 }
  0x16   : > { %s3466_s30 = scalar_select %p2980_p8, 1, 0 }
  0x17   : > { %s2986_s16 = scalar_select %p394_p7, %s2827_s20, %s396_s27  }
  0x18   : > { %3467 = sst [smem:[#allocation19_spill]] %s3466_s30  ;;  %p2988_p10 = pnand %p2283_p6, %p420_p9 }
  0x19   : > { %3468 = sst [smem:[#allocation20_spill]] %s2986_s16  ;;  %s2841_s25 = smov [#allocation3]  }
  0x1a   : > { %s3469_s17 = scalar_select %p2988_p10, 1, 0 }
  0x1b   : > { %s3470_s18 = scalar_select %p2992_p11, 1, 0 }
  0x1c   : > { %p2484_p12 = pneg %p2988_p10  ;;  %s444_s29 = sshll.u32 %s2841_s25, 4  ;;  %s445_s29 = int_to_ptr.vmem [resolvable:$true] %s444_s29 }
  0x1d   : > { %s2842_s27 = smov [#allocation6]   ;;  %s2697_s20 = scalar_lea.hbm %s3433_s8, 2048 }
  0x1e   : > { %p3000_p13 = pnand %p2992_p11, %p2484_p12  ;;  %s466_s22 = sshll.u32 %s2842_s27, 4  ;;  %s3004_s22 = int_to_ptr.vmem [resolvable:$true] %s466_s22 }
  0x1f   : > { %p2698_p0 = scmp.ne.s32.totalorder %s3433_s8, %s2697_s20  ;;  %p2704_p5 = scmp.lt.u32.totalorder %s2697_s20, %s3433_s8 }
  0x20   : > { %p2699_p1 = pneg %p3000_p13 }
  0x22   : > { %p2700_p2 = pnand %p2699_p1, %p2698_p0 }
  0x24   : > { %p2701_p3 = pneg %p2700_p2 }
  0x26   : > { %p2706_p6 = pnand %p2704_p5, %p2701_p3 }
  0x28   : > { %2709 = shalt.err (!%p2706_p6)
}
  0x29   : > { %s2710_s27 = scalar_lea.vmem %s445_s29, 2048  ;;  %p2718_p8 = scmp.lt.s32.totalorder %s445_s29, %s445_s29 }
  0x2a   : > { %p2711_p7 = scmp.ne.s32.totalorder %s445_s29, %s2710_s27  ;;  %p2719_p4 = scmp.lt.s32.totalorder %s2710_s27, %s2710_s27 }
  0x2c   : > { %p2713_p9 = pnand %p2711_p7, %p2699_p1  ;;  %p2720_p11 = por %p2719_p4, %p2718_p8 }
  0x2e   : > { %p2714_p12 = pneg %p2713_p9 }
  0x30   : > { %p2721_p10 = pnand %p2720_p11, %p2714_p12 }
  0x32   : > { %2724 = shalt.err (!%p2721_p10)
}
  0x33   : > { %s2843_s23 = smov 128   ;;  %s2844_s30 = smov 8  }
  0x34   : > { %2487 = dma.hbm_to_vmem [thread:$0]  (!%p3000_p13), %s3433_s8, 2048, %s445_s29, [#allocation4], %s2843_s23, %s2843_s23, %s2844_s30  }
  0x35   : > { %s2725_s25 = scalar_lea.hbm %s3437_s12, 4096 }
  0x36   : > { %p2726_p0 = scmp.ne.s32.totalorder %s3437_s12, %s2725_s25  ;;  %p2732_p10 = scmp.lt.u32.totalorder %s2725_s25, %s3437_s12 }
  0x38   : > { %p2728_p4 = pnand %p2726_p0, %p2699_p1 }
  0x3a   : > { %p2729_p8 = pneg %p2728_p4 }
  0x3c   : > { %p2734_p11 = pnand %p2732_p10, %p2729_p8 }
  0x3e   : > { %2737 = shalt.err (!%p2734_p11)
}
  0x3f   : > { %s2738_s29 = scalar_lea.vmem %s3004_s22, 4096  ;;  %p2746_p6 = scmp.lt.s32.totalorder %s3004_s22, %s3004_s22 }
  0x40   : > { %p2739_p2 = scmp.ne.s32.totalorder %s3004_s22, %s2738_s29  ;;  %p2747_p7 = scmp.lt.s32.totalorder %s2738_s29, %s2738_s29 }
  0x42   : > { %p2741_p3 = pnand %p2739_p2, %p2699_p1  ;;  %p2748_p9 = por %p2747_p7, %p2746_p6 }
  0x44   : > { %p2742_p5 = pneg %p2741_p3 }
  0x46   : > { %p2749_p12 = pnand %p2748_p9, %p2742_p5 }
  0x48   : > { %2752 = shalt.err (!%p2749_p12)
}
  0x49   : > { %2490 = dma.hbm_to_vmem [thread:$0]  (!%p3000_p13), %s3437_s12, 4096, %s3004_s22, [#allocation7], %s2843_s23, %s2843_s23, %s2844_s30  }
  0x4a   : > { %p3472_p0 = scmp.ne.s32.totalorder %s3469_s17, 0 }
  0x4b   : > { %p3473_p4 = scmp.ne.s32.totalorder (!%p3472_p0), %s3470_s18, 0 }
  0x4c   : > { %524 = sbr.rel (%p3472_p0) target bundleno = 1489 (0x5d1), region = 76 }
  0x53   : > { %2806 = dma.done.wait (%p3473_p4), [#allocation4], 2048  }
  0x54   : > { %2808 = vsyncadd (%p3473_p4), [#allocation4], 4294965248 }
  0x55   : > { %2810 = dma.done.wait (%p3473_p4), [#allocation7], 4096  }
  0x56   : > { %2812 = vsyncadd (%p3473_p4), [#allocation7], 4294963200  ;;  %p606_p1 = scmp.lt.s32.totalorder %s2831_s21, 1  ;;  %v2845_v0 = vmov 1   ;;  %v2846_v1 = vmov 0   ;;  %v2847_v4 = vmov 2   ;;  %v701_v18 = vlaneseq }
  0x57   : > { %2560 = vset.pattern.permute.xlu1 %v2845_v0  ;;  %2559 = vset.pattern.permute.xlu0 %v2846_v1  ;;  %vm880_vm0 = vcmask 1040384   ;;  %vm881_vm1 = vcmask 1041408   ;;  %v2848_v10 = vmov 65535   ;;  %v848_v12 = vld [vmem:[%s3429_s4] sm:$0x3]  ;;  %v2574_v17 = vld [vmem:[%s3431_s6 + $0x8] sm:$0xff]  }
  0x58   : > { %s3066_s22 = scalar_select %p606_p1, %s2831_s21, 1  ;;  %v882_v11 = vsel %vm880_vm0, 4294967295, %v2848_v10  ;;  %v2573_v16 = vld [vmem:[%s3431_s6] sm:$0xff]   ;;  %v3100_v20 = vshrl.u32 %v701_v18, 7  ;;  %vm831_vm2 = vcmask 23552   ;;  %vm1047_vm3 = vcmask 523264  }
  0x59   : > { %v883_v13 = vsel %vm881_vm1, %v882_v11, 0  ;;  %2450 = vmatprep.subr.bf16.mxu1 %v2573_v16  ;;  %vm1529_vm4 = vcmask 1041409   ;;  %vm1531_vm5 = vcmask 1043459   ;;  %vm1533_vm6 = vcmask 1045509   ;;  %s3476_s24 = sld [smem:[#allocation18_spill]] }
  0x5a   : > { %s3069_s26 = sshll.u32 %s3066_s22, 6  ;;  %v885_v14 = vand.u32 %v883_v13, %v848_v12  ;;  %2451 = vmatpush3.bf16.msra.mxu1 %v2573_v16  ;;  %s2295_s25 = sshll.u32 %s3066_s22, 2  ;;  %v799_v22 = vsub.s32 2, %v3100_v20  ;;  %v3107_v24 = vsub.s32 1, %v3100_v20  ;;  %v3110_v25 = vsub.s32 0, %v3100_v20 }
  0x5b   : > { %s3075_s23 = scalar_lea.vmem %s3425_s0, %s3069_s26  ;;  %2452 = vmatprep.subr.bf16.mxu1 %v2574_v17  ;;  %s628_s13 = scalar_lea.vmem %s3427_s2, %s2295_s25  ;;  %vm1535_vm7 = vcmask 1047559   ;;  %vm2079_vm8 = vcmp.lt.s32.totalorder %v701_v18, 256 }
  0x5c   : > { %v643_v2 = vld [vmem:[%s3075_s23] sm:$0xff]  ;;  %v644_v3 = vld [vmem:[%s3075_s23 + $0x8] sm:$0xff]  ;;  %v646_v5 = vld [vmem:[%s3075_s23 + $0x18] sm:$0xff]  ;;  %2432 = vmatprep.subr.bf16.mxu0 %v885_v14  ;;  %s631_s17 = scalar_lea.vmem %s3428_s3, %s3066_s22  ;;  %s3133_s30 = scalar_lea.vmem %s3439_s14, %s3069_s26 }
  0x5d   : > { %714 = vperm.xlu1 %2560, %v643_v2   ;;  %663 = vperm.xlu0 %2559, %v643_v2   ;;  %v645_v6 = vld [vmem:[%s3075_s23 + $0x10] sm:$0xff]  ;;  %v647_v7 = vld [vmem:[%s3075_s23 + $0x20] sm:$0xff]  ;;  %v648_v8 = vld [vmem:[%s3075_s23 + $0x28] sm:$0xff]  ;;  %s623_s20 = scalar_lea.vmem %s3426_s1, %s3069_s26  ;;  %s2410_s25 = sshll.u32 %s2831_s21, 5 }
  0x5e   : > { %v649_v9 = vld [vmem:[%s3075_s23 + $0x30] sm:$0xff]  ;;  %2433 = vmatpush3.bf16.msra.mxu0 %v885_v14  ;;  %v650_v15 = vld [vmem:[%s3075_s23 + $0x38] sm:$0xff]  ;;  %2453 = vmatpush3.bf16.msra.mxu1 %v2574_v17  ;;  %v659_v27 = vld [vmem:[%s628_s13] sm:$0x7]  ;;  %s3477_s28 = sld [smem:[#allocation22_spill]]  ;;  %s2852_s21 = smov [#allocation8]  }
  0x5f   : > { %v3112_v28 = vrot.slane %v659_v27, %v799_v22  ;;  %v3115_v29 = vrot.slane %v659_v27, %v3107_v24  ;;  %v3118_v30 = vrot.slane %v659_v27, %v3110_v25  ;;  %v3127_v39 = vld [vmem:[%s631_s17] ss:$0 sm:$0xff]  ;;  %p3478_p8 = scmp.ne.s32.totalorder %s3476_s24, 0 }
  0x61   : > { %718 = vperm.xlu1 %2560, %v644_v3   ;;  %2564 = vset.pattern.permute.xlu0 %v2847_v4 }
  0x62   : > { %770 = vperm.xlu0 %2564, %v644_v3  }
  0x64   : > { %s3378_s17 = scalar_lea.hbm %s3477_s28, %s2410_s25 }
  0x65   : > { %2561 = vset.pattern.permute.xlu1 %v2846_v1 }
  0x66   : > { %678 = vperm.xlu1 %2561, %v646_v5   ;;  %2565 = vset.pattern.permute.xlu0 %v2846_v1 }
  0x67   : > { %668 = vperm.xlu0 %2565, %v644_v3  }
  0x6a   : > { %2562 = vset.pattern.permute.xlu1 %v2845_v0 }
  0x6b   : > { %726 = vperm.xlu1 %2562, %v646_v5   ;;  %673 = vperm.xlu0 %2565, %v645_v6  }
  0x6f   : > { %2563 = vset.pattern.permute.xlu1 %v2847_v4  ;;  %683 = vperm.xlu0 %2565, %v647_v7  }
  0x70   : > { %766 = vperm.xlu1 %2563, %v643_v2  }
  0x73   : > { %2566 = vset.pattern.permute.xlu0 %v2845_v0 }
  0x74   : > { %774 = vperm.xlu1 %2563, %v645_v6   ;;  %722 = vperm.xlu0 %2566, %v645_v6  }
  0x78   : > { %778 = vperm.xlu1 %2563, %v646_v5   ;;  %734 = vperm.xlu0 %2566, %v648_v8  }
  0x7c   : > { %2567 = vset.pattern.permute.xlu1 %v2846_v1  ;;  %738 = vperm.xlu0 %2566, %v649_v9  }
  0x7d   : > { %688 = vperm.xlu1 %2567, %v648_v8  }
  0x80   : > { %2571 = vset.pattern.permute.xlu0 %v2847_v4 }
  0x81   : > { %2568 = vset.pattern.permute.xlu1 %v2845_v0  ;;  %782 = vperm.xlu0 %2571, %v647_v7  }
  0x82   : > { %730 = vperm.xlu1 %2568, %v647_v7  }
  0x85   : > { %794 = vperm.xlu0 %2571, %v650_v15  }
  0x86   : > { %2569 = vset.pattern.permute.xlu1 %v2846_v1 }
  0x87   : > { %693 = vperm.xlu1 %2569, %v649_v9  }
  0x8b   : > { %698 = vperm.xlu1 %2569, %v650_v15  }
  0x8f   : > { %2570 = vset.pattern.permute.xlu1 %v2845_v0 }
  0x90   : > { %742 = vperm.xlu1 %2570, %v650_v15  }
  0x94   : > { %2572 = vset.pattern.permute.xlu1 %v2847_v4 }
  0x95   : > { %786 = vperm.xlu1 %2572, %v648_v8  }
  0x99   : > { %790 = vperm.xlu1 %2572, %v649_v9  }
  0xdc   : > { %v715_v19 = vpop.permute.xlu1 %714  ;;  %v664_v21 = vpop.permute.xlu0 %663 }
  0xdd   : > { %v749_v41 = vmul.f32 %v3115_v29, %v715_v19  ;;  %v705_v42 = vmul.f32 %v3118_v30, %v664_v21 }
  0xdf   : > { %v757_v46 = vadd.f32 %v749_v41, %v705_v42 }
  0xe0   : > { %v719_v23 = vpop.permute.xlu1 %718 }
  0xe1   : > { %v771_v26 = vpop.permute.xlu0 %770  ;;  %v750_v33 = vmul.f32 %v3115_v29, %v719_v23 }
  0xe2   : > { %v802_v34 = vmul.f32 %v3112_v28, %v771_v26 }
  0xe5   : > { %v679_v31 = vpop.permute.xlu1 %678 }
  0xe6   : > { %v669_v32 = vpop.permute.xlu0 %668  ;;  %v708_v55 = vmul.f32 %v3118_v30, %v679_v31 }
  0xe7   : > { %v706_v35 = vmul.f32 %v3118_v30, %v669_v32 }
  0xe9   : > { %v758_v36 = vadd.f32 %v750_v33, %v706_v35 }
  0xea   : > { %v727_v37 = vpop.permute.xlu1 %726  ;;  %v674_v38 = vpop.permute.xlu0 %673 }
  0xeb   : > { %v810_v40 = vadd.f32 %v802_v34, %v758_v36  ;;  %v707_v48 = vmul.f32 %v3118_v30, %v674_v38  ;;  %v752_v52 = vmul.f32 %v3115_v29, %v727_v37 }
  0xed   : > { %v824_v43 = vadd.f32 %v3127_v39, %v810_v40  ;;  %v760_v61 = vadd.f32 %v752_v52, %v708_v55  ;;  %v656_v52 = vld [vmem:[%s623_s20 + $0x28] sm:$0xff]  ;;  %v658_v55 = vld [vmem:[%s623_s20 + $0x38] sm:$0xff] }
  0xee   : > { %v684_v44 = vpop.permute.xlu0 %683 }
  0xef   : > { %v767_v45 = vpop.permute.xlu1 %766  ;;  %833 = vst.msk [vmem:[%s3133_s30 + $0x8] sm:$0xff] %vm831_vm2, %v824_v43  ;;  %v709_v9 = vmul.f32 %v3118_v30, %v684_v44 }
  0xf0   : > { %v801_v47 = vmul.f32 %v3112_v28, %v767_v45  ;;  %v651_v45 = vld [vmem:[%s623_s20] sm:$0xff] }
  0xf2   : > { %v809_v49 = vadd.f32 %v801_v47, %v757_v46  ;;  %v652_v46 = vld [vmem:[%s623_s20 + $0x8] sm:$0xff] }
  0xf3   : > { %v775_v50 = vpop.permute.xlu1 %774  ;;  %v723_v51 = vpop.permute.xlu0 %722 }
  0xf4   : > { %v751_v53 = vmul.f32 %v3115_v29, %v723_v51  ;;  %v823_v54 = vadd.f32 %v3127_v39, %v809_v49  ;;  %v803_v56 = vmul.f32 %v3112_v28, %v775_v50  ;;  %v653_v50 = vld [vmem:[%s623_s20 + $0x10] sm:$0xff]  ;;  %v655_v51 = vld [vmem:[%s623_s20 + $0x20] sm:$0xff] }
  0xf6   : > { %v759_v57 = vadd.f32 %v751_v53, %v707_v48  ;;  %832 = vst.msk [vmem:[%s3133_s30] sm:$0xff] %vm831_vm2, %v823_v54  ;;  %v840_v58 = vpack.c.bf16 %v824_v43, %v823_v54  ;;  %v844_v48 = vpack.c.bf16 %v652_v46, %v651_v45  ;;  %v846_v54 = vpack.c.bf16 %v656_v52, %v655_v51 }
  0xf7   : > { %v779_v59 = vpop.permute.xlu1 %778  ;;  %v735_v60 = vpop.permute.xlu0 %734 }
  0xf8   : > { %v811_v62 = vadd.f32 %v803_v56, %v759_v57  ;;  %v804_v63 = vmul.f32 %v3112_v28, %v779_v59  ;;  %2434 = vmatprep.mubr.msk.bf16.mxu0 %vm831_vm2, %v840_v58  ;;  %v754_v26 = vmul.f32 %v3115_v29, %v735_v60  ;;  %v2575_v57 = vld [vmem:[%s3431_s6 + $0x10] sm:$0xff]   ;;  %v2576_v58 = vld [vmem:[%s3431_s6 + $0x18] sm:$0xff]   ;;  %v2577_v59 = vld [vmem:[#allocation3] ss:$8 sps:$4 sm:$0xff]  }
  0xf9   : > { %2454 = vmatprep.subr.bf16.mxu1 %v2575_v57  ;;  %v2579_v60 = vld [vmem:[#allocation3 + $0x4] ss:$8 sps:$4 sm:$0xff]  }
  0xfa   : > { %v825_v0 = vadd.f32 %v3127_v39, %v811_v62  ;;  %v812_v2 = vadd.f32 %v804_v63, %v760_v61  ;;  %2455 = vmatpush3.bf16.msra.mxu1 %v2575_v57  ;;  %v2582_v61 = vld [vmem:[#allocation3 + $0x14] ss:$8 sps:$4 sm:$0xff]   ;;  %1301 = vmatprep.subr.bf16.mxu0 %v2579_v60  ;;  %v2580_v62 = vld [vmem:[#allocation3 + $0x10] ss:$8 sps:$4 sm:$0xff]   ;;  %v2585_v63 = vld [vmem:[#allocation3 + $0x24] ss:$8 sps:$4 sm:$0xff]  }
  0xfb   : > { %v739_v3 = vpop.permute.xlu0 %738  ;;  %2456 = vmatprep.subr.bf16.mxu1 %v2576_v58 }
  0xfc   : > { %834 = vst.msk [vmem:[%s3133_s30 + $0x10] sm:$0xff] %vm831_vm2, %v825_v0  ;;  %v826_v4 = vadd.f32 %v3127_v39, %v812_v2  ;;  %v689_v5 = vpop.permute.xlu1 %688  ;;  %v755_v35 = vmul.f32 %v3115_v29, %v739_v3  ;;  %v2588_v2 = vld [vmem:[#allocation3 + $0x34] ss:$8 sps:$4 sm:$0xff]   ;;  %v2586_v3 = vld [vmem:[#allocation3 + $0x30] ss:$8 sps:$4 sm:$0xff]  }
  0xfd   : > { %v710_v27 = vmul.f32 %v3118_v30, %v689_v5  ;;  %v2589_v5 = vld [vmem:[#allocation3 + $0x40] ss:$8 sps:$4 sm:$0xff]  }
  0xfe   : > { %835 = vst.msk [vmem:[%s3133_s30 + $0x18] sm:$0xff] %vm831_vm2, %v826_v4  ;;  %v841_v6 = vpack.c.bf16 %v826_v4, %v825_v0  ;;  %2457 = vmatpush3.bf16.msra.mxu1 %v2576_v58  ;;  %v2583_v0 = vld [vmem:[#allocation3 + $0x20] ss:$8 sps:$4 sm:$0xff]   ;;  %v2591_v4 = vld [vmem:[#allocation3 + $0x44] ss:$8 sps:$4 sm:$0xff]  }
  0xff   : > { %v762_v34 = vadd.f32 %v754_v26, %v710_v27 }
 0x100   : > { %2435 = vmatmul.mubr.msk.bf16.vlgmr.msra.gmra.mrb[0].mxu0 %vm831_vm2, %v841_v6  ;;  %v783_v7 = vpop.permute.xlu0 %782  ;;  %v2594_v6 = vld [vmem:[#allocation3 + $0x54] ss:$8 sps:$4 sm:$0xff]  }
 0x101   : > { %v731_v8 = vpop.permute.xlu1 %730  ;;  %v805_v11 = vmul.f32 %v3112_v28, %v783_v7  ;;  %1302 = vmatpush1.bf16.msra.mxu0 %v2577_v59  ;;  %v2592_v7 = vld [vmem:[#allocation3 + $0x50] ss:$8 sps:$4 sm:$0xff]  }
 0x102   : > { %v753_v10 = vmul.f32 %v3115_v29, %v731_v8  ;;  %1303 = vmatprep.subr.bf16.mxu0 %v2582_v61  ;;  %v2299_v8 = vld [vmem:[%s3430_s5] ss:$0 sm:$0xff] }
 0x104   : > { %v761_v12 = vadd.f32 %v753_v10, %v709_v9  ;;  %v795_v17 = vpop.permute.xlu0 %794 }
 0x105   : > { %v808_v23 = vmul.f32 %v3112_v28, %v795_v17  ;;  %1304 = vmatpush1.bf16.msra.mxu0 %v2580_v62 }
 0x106   : > { %v813_v13 = vadd.f32 %v805_v11, %v761_v12  ;;  %v694_v14 = vpop.permute.xlu1 %693  ;;  %1305 = vmatprep.subr.bf16.mxu0 %v2585_v63 }
 0x107   : > { %v711_v36 = vmul.f32 %v3118_v30, %v694_v14 }
 0x108   : > { %v827_v15 = vadd.f32 %v3127_v39, %v813_v13 }
 0x109   : > { %v763_v42 = vadd.f32 %v755_v35, %v711_v36  ;;  %1306 = vmatpush1.bf16.msra.mxu0 %v2583_v0 }
 0x10a   : > { %836 = vst.msk [vmem:[%s3133_s30 + $0x20] sm:$0xff] %vm831_vm2, %v827_v15  ;;  %v699_v16 = vpop.permute.xlu1 %698  ;;  %1307 = vmatprep.subr.bf16.mxu0 %v2588_v2 }
 0x10b   : > { %v712_v21 = vmul.f32 %v3118_v30, %v699_v16 }
 0x10d   : > { %1308 = vmatpush1.bf16.msra.mxu0 %v2586_v3 }
 0x10e   : > { %1309 = vmatprep.subr.bf16.mxu0 %v2591_v4 }
 0x10f   : > { %v743_v19 = vpop.permute.xlu1 %742 }
 0x110   : > { %v756_v22 = vmul.f32 %v3115_v29, %v743_v19 }
 0x111   : > { %1310 = vmatpush1.bf16.msra.mxu0 %v2589_v5 }
 0x112   : > { %v764_v31 = vadd.f32 %v756_v22, %v712_v21  ;;  %1311 = vmatprep.subr.bf16.mxu0 %v2594_v6  ;;  %v2597_v6 = vld [vmem:[#allocation3 + $0x64] ss:$8 sps:$4 sm:$0xff]  }
 0x114   : > { %v816_v32 = vadd.f32 %v808_v23, %v764_v31  ;;  %v787_v33 = vpop.permute.xlu1 %786 }
 0x115   : > { %v806_v37 = vmul.f32 %v3112_v28, %v787_v33  ;;  %1312 = vmatpush1.bf16.msra.mxu0 %v2592_v7  ;;  %v2595_v7 = vld [vmem:[#allocation3 + $0x60] ss:$8 sps:$4 sm:$0xff]  }
 0x116   : > { %v830_v38 = vadd.f32 %v3127_v39, %v816_v32  ;;  %1313 = vmatprep.subr.bf16.mxu0 %v2597_v6 }
 0x117   : > { %v814_v40 = vadd.f32 %v806_v37, %v762_v34 }
 0x118   : > { %839 = vst.msk [vmem:[%s3133_s30 + $0x38] sm:$0xff] %vm831_vm2, %v830_v38  ;;  %v791_v41 = vpop.permute.xlu1 %790 }
 0x119   : > { %v828_v43 = vadd.f32 %v3127_v39, %v814_v40  ;;  %v807_v29 = vmul.f32 %v3112_v28, %v791_v41  ;;  %v654_v28 = vld [vmem:[%s623_s20 + $0x18] sm:$0xff]  ;;  %1314 = vmatpush1.bf16.msra.mxu0 %v2595_v7 }
 0x11a   : > { %v845_v53 = vpack.c.bf16 %v654_v28, %v653_v50 }
 0x11b   : > { %837 = vst.msk [vmem:[%s3133_s30 + $0x28] sm:$0xff] %vm831_vm2, %v828_v43  ;;  %v842_v30 = vpack.c.bf16 %v828_v43, %v827_v15  ;;  %v815_v44 = vadd.f32 %v807_v29, %v763_v42 }
 0x11d   : > { %v829_v47 = vadd.f32 %v3127_v39, %v815_v44  ;;  %2438 = vmatprep.mubr.msk.bf16.mxu0 %vm831_vm2, %v842_v30  ;;  %v657_v39 = vld [vmem:[%s623_s20 + $0x30] sm:$0xff]  ;;  %s3475_s20 = sld [smem:[#allocation21_spill]] }
 0x11e   : > { %v847_v56 = vpack.c.bf16 %v658_v55, %v657_v39 }
 0x11f   : > { %838 = vst.msk [vmem:[%s3133_s30 + $0x30] sm:$0xff] %vm831_vm2, %v829_v47  ;;  %v843_v49 = vpack.c.bf16 %v830_v38, %v829_v47  ;;  %s3474_s30 = sld [smem:[#allocation13_spill]] }
 0x121   : > { %2439 = vmatmul.mubr.msk.bf16.gmra.mrb[4].mxu0 %vm831_vm2, %v843_v49 }
 0x122   : > { %2442 = vmatprep.mubr.msk.bf16.mxu0 %vm831_vm2, %v844_v48 }
 0x125   : > { %s602_s26 = sand.u32 1, %s3474_s30   ;;  %s2757_s30 = sshll.u32 %s2852_s21, 4  ;;  %s2758_s30 = int_to_ptr.vmem [resolvable:$false] %s2757_s30 }
 0x126   : > { %s2290_s16 = sshll.u32 %s602_s26, 1  ;;  %s2092_s23 = scalar_lea.sflag [#allocation5], %s602_s26 }
 0x127   : > { %s604_s27 = scalar_lea.vmem [#allocation8], %s2290_s16  ;;  %s2759_s22 = scalar_lea.vmem %s2758_s30, 64 }
 0x128   : > { %s2110_s29 = sshll.u32 %s604_s27, 4  ;;  %s3380_s29 = int_to_ptr.vmem [resolvable:$true] %s2110_s29 }
 0x129   : > { %2443 = vmatmul.mubr.msk.bf16.gmra.mrb[8].mxu0 %vm831_vm2, %v845_v53  ;;  %s2753_s18 = scalar_lea.vmem %s3380_s29, 32  ;;  %p2760_p2 = scmp.lt.s32.totalorder %s3380_s29, %s2758_s30 }
 0x12a   : > { %2446 = vmatprep.mubr.msk.bf16.mxu0 %vm831_vm2, %v846_v54  ;;  %p2754_p13 = scmp.ne.s32.totalorder %s3380_s29, %s2753_s18  ;;  %p2761_p3 = scmp.lt.s32.totalorder %s2759_s22, %s2753_s18 }
 0x12c   : > { %p2755_p10 = pnand %p2754_p13, %p3478_p8  ;;  %p2762_p5 = por %p2761_p3, %p2760_p2 }
 0x12e   : > { %p2756_p11 = pneg %p2755_p10 }
 0x130   : > { %p2763_p6 = pnand %p2762_p5, %p2756_p11 }
 0x131   : > { %2447 = vmatmul.mubr.msk.bf16.gmra.mrb[12].mxu0 %vm831_vm2, %v847_v56 }
 0x132   : > { %1333 = vmatprep.mubr.bf16.mxu0 %v2846_v1 }
 0x1d3   : > { %v2436_v9 = vpop.f32.mrb[0].mxu0 }
 0x1d4   : > { %v930_v10 = vadd.f32 %v2436_v9, %v2299_v8  ;;  %v921_v11 = vpop.f32.mrb[1].mxu0  ;;  %v2600_v9 = vld [vmem:[#allocation3 + $0x74] ss:$8 sps:$4 sm:$0xff]  }
 0x1d5   : > { %v922_v12 = vadd.f32 %v2299_v8, %v921_v11  ;;  %v2437_v13 = vpop.f32.mrb[2].mxu0  ;;  %1315 = vmatprep.subr.bf16.mxu0 %v2600_v9  ;;  %v2603_v9 = vld [vmem:[%s3435_s10 + $0x4] ss:$8 sps:$4 sm:$0xff]  }
 0x1d6   : > { %v933_v14 = vadd.f32 %v2437_v13, %v2299_v8  ;;  %v924_v15 = vpop.f32.mrb[3].mxu0  ;;  %v986_v17 = vmax.f32 %v930_v10, 0.0  ;;  %v2598_v10 = vld [vmem:[#allocation3 + $0x70] ss:$8 sps:$4 sm:$0xff]   ;;  %1761 = vmatprep.subr.bf16.mxu1 %v2603_v9 }
 0x1d7   : > { %v925_v16 = vadd.f32 %v2299_v8, %v924_v15  ;;  %v984_v21 = vmax.f32 %v922_v12, 0.0  ;;  %1316 = vmatpush1.bf16.msra.mxu0 %v2598_v10  ;;  %v2601_v10 = vld [vmem:[%s3435_s10] ss:$8 sps:$4 sm:$0xff]  }
 0x1d8   : > { %v987_v19 = vmax.f32 %v933_v14, 0.0 }
 0x1d9   : > { %v985_v22 = vmax.f32 %v925_v16, 0.0 }
 0x1da   : > { %v1001_v23 = vpack.c.bf16 %v987_v19, %v986_v17 }
 0x1db   : > { %v1000_v26 = vpack.c.bf16 %v985_v22, %v984_v21 }
 0x1dd   : > { %2458 = vmatprep.mubr.msk.bf16.mxu1 %vm1047_vm3, %v1000_v26 }
 0x1de   : > { %2459 = vmatmul.mubr.msk.bf16.vlgmr.msra.gmra.mrb[0].mxu1 %vm1047_vm3, %v1001_v23 }
 0x1df   : > { %1762 = vmatpush1.bf16.msra.mxu1 %v2601_v10  ;;  %v2666_v10 = vld [vmem:[#allocation6 + $0x54] ss:$8 sps:$4 sm:$0xff]  }
 0x1f4   : > { %v2440_v27 = vpop.f32.mrb[4].mxu0 }
 0x1f5   : > { %v946_v31 = vadd.f32 %v2440_v27, %v2299_v8  ;;  %v937_v32 = vpop.f32.mrb[5].mxu0 }
 0x1f6   : > { %v938_v33 = vadd.f32 %v2299_v8, %v937_v32  ;;  %v2441_v34 = vpop.f32.mrb[6].mxu0 }
 0x1f7   : > { %v949_v35 = vadd.f32 %v2441_v34, %v2299_v8  ;;  %v940_v36 = vpop.f32.mrb[7].mxu0  ;;  %v990_v38 = vmax.f32 %v946_v31, 0.0 }
 0x1f8   : > { %v941_v37 = vadd.f32 %v2299_v8, %v940_v36  ;;  %v988_v41 = vmax.f32 %v938_v33, 0.0 }
 0x1f9   : > { %v991_v40 = vmax.f32 %v949_v35, 0.0 }
 0x1fa   : > { %v989_v42 = vmax.f32 %v941_v37, 0.0 }
 0x1fb   : > { %v1003_v43 = vpack.c.bf16 %v991_v40, %v990_v38 }
 0x1fc   : > { %v1002_v29 = vpack.c.bf16 %v989_v42, %v988_v41  ;;  %v2444_v30 = vpop.f32.mrb[8].mxu0 }
 0x1fd   : > { %v962_v44 = vadd.f32 %v2444_v30, %v2299_v8  ;;  %v953_v45 = vpop.f32.mrb[9].mxu0 }
 0x1fe   : > { %v954_v46 = vadd.f32 %v2299_v8, %v953_v45  ;;  %2462 = vmatprep.mubr.msk.bf16.mxu1 %vm1047_vm3, %v1002_v29  ;;  %v2445_v47 = vpop.f32.mrb[10].mxu0 }
 0x1ff   : > { %v994_v48 = vmax.f32 %v962_v44, 0.0  ;;  %v965_v49 = vadd.f32 %v2445_v47, %v2299_v8  ;;  %2463 = vmatmul.mubr.msk.bf16.gmra.mrb[4].mxu1 %vm1047_vm3, %v1003_v43  ;;  %v956_v50 = vpop.f32.mrb[11].mxu0 }
 0x200   : > { %v992_v28 = vmax.f32 %v954_v46, 0.0  ;;  %v957_v51 = vadd.f32 %v2299_v8, %v956_v50 }
 0x201   : > { %v995_v52 = vmax.f32 %v965_v49, 0.0 }
 0x202   : > { %v993_v53 = vmax.f32 %v957_v51, 0.0 }
 0x203   : > { %v1005_v54 = vpack.c.bf16 %v995_v52, %v994_v48 }
 0x204   : > { %v1004_v39 = vpack.c.bf16 %v993_v53, %v992_v28  ;;  %v2448_v55 = vpop.f32.mrb[12].mxu0 }
 0x205   : > { %v978_v56 = vadd.f32 %v2448_v55, %v2299_v8  ;;  %v969_v57 = vpop.f32.mrb[13].mxu0 }
 0x206   : > { %2466 = vmatprep.mubr.msk.bf16.mxu1 %vm1047_vm3, %v1004_v39  ;;  %v970_v58 = vadd.f32 %v2299_v8, %v969_v57  ;;  %v2449_v59 = vpop.f32.mrb[14].mxu0 }
 0x207   : > { %2467 = vmatmul.mubr.msk.bf16.gmra.mrb[8].mxu1 %vm1047_vm3, %v1005_v54  ;;  %v998_v60 = vmax.f32 %v978_v56, 0.0  ;;  %v981_v61 = vadd.f32 %v2449_v59, %v2299_v8  ;;  %v972_v62 = vpop.f32.mrb[15].mxu0 }
 0x208   : > { %v996_v63 = vmax.f32 %v970_v58, 0.0  ;;  %v973_v0 = vadd.f32 %v2299_v8, %v972_v62  ;;  %v2308_v8 = vld [vmem:[%s3432_s7] ss:$0 sm:$0xff] }
 0x209   : > { %v999_v2 = vmax.f32 %v981_v61, 0.0 }
 0x20a   : > { %v997_v3 = vmax.f32 %v973_v0, 0.0 }
 0x20b   : > { %v1007_v4 = vpack.c.bf16 %v999_v2, %v998_v60 }
 0x20c   : > { %v1006_v5 = vpack.c.bf16 %v997_v3, %v996_v63 }
 0x20e   : > { %2470 = vmatprep.mubr.msk.bf16.mxu1 %vm1047_vm3, %v1006_v5 }
 0x20f   : > { %2471 = vmatmul.mubr.msk.bf16.gmra.mrb[12].mxu1 %vm1047_vm3, %v1007_v4 }
 0x2b1   : > { %v2460_v11 = vpop.f32.mrb[0].mxu1 }
 0x2b2   : > { %v1115_v12 = vadd.f32 %v2460_v11, %v2308_v8  ;;  %v1106_v13 = vpop.f32.mrb[1].mxu1  ;;  %v2604_v11 = vld [vmem:[%s3435_s10 + $0x10] ss:$8 sps:$4 sm:$0xff]  }
 0x2b3   : > { %v1107_v14 = vadd.f32 %v2308_v8, %v1106_v13  ;;  %v2461_v15 = vpop.f32.mrb[2].mxu1  ;;  %v2612_v13 = vld [vmem:[%s3435_s10 + $0x34] ss:$8 sps:$4 sm:$0xff]  }
 0x2b4   : > { %v1118_v16 = vadd.f32 %v2461_v15, %v2308_v8  ;;  %v1109_v17 = vpop.f32.mrb[3].mxu1  ;;  %v1171_v21 = vmax.f32 %v1115_v12, 0.0  ;;  %v2607_v12 = vld [vmem:[%s3435_s10 + $0x20] ss:$8 sps:$4 sm:$0xff]   ;;  %v2615_v15 = vld [vmem:[%s3435_s10 + $0x44] ss:$8 sps:$4 sm:$0xff]  }
 0x2b5   : > { %v1110_v19 = vadd.f32 %v2308_v8, %v1109_v17  ;;  %v1169_v23 = vmax.f32 %v1107_v14, 0.0  ;;  %v2610_v14 = vld [vmem:[%s3435_s10 + $0x30] ss:$8 sps:$4 sm:$0xff]   ;;  %v2618_v17 = vld [vmem:[%s3435_s10 + $0x54] ss:$8 sps:$4 sm:$0xff]  }
 0x2b6   : > { %v1172_v22 = vmax.f32 %v1118_v16, 0.0  ;;  %v2613_v16 = vld [vmem:[%s3435_s10 + $0x40] ss:$8 sps:$4 sm:$0xff]  }
 0x2b7   : > { %v1170_v26 = vmax.f32 %v1110_v19, 0.0  ;;  %v2616_v19 = vld [vmem:[%s3435_s10 + $0x50] ss:$8 sps:$4 sm:$0xff]  }
 0x2b8   : > { %v1186_v27 = vpack.c.bf16 %v1172_v22, %v1171_v21  ;;  %v2621_v21 = vld [vmem:[%s3435_s10 + $0x64] ss:$8 sps:$4 sm:$0xff]   ;;  %v2619_v22 = vld [vmem:[%s3435_s10 + $0x60] ss:$8 sps:$4 sm:$0xff]  }
 0x2b9   : > { %v1185_v31 = vpack.c.bf16 %v1170_v26, %v1169_v23  ;;  %v2624_v23 = vld [vmem:[%s3435_s10 + $0x74] ss:$8 sps:$4 sm:$0xff]   ;;  %v2622_v26 = vld [vmem:[%s3435_s10 + $0x70] ss:$8 sps:$4 sm:$0xff]  }
 0x2bb   : > { %1334 = vmatmul.mubr.bf16.vlgmr.msra.gmra.mrb[16].mxu0 %v1185_v31  ;;  %v2625_v31 = vld [vmem:[%s3435_s10 + $0x80] ss:$8 sps:$4 sm:$0xff]  }
 0x2bc   : > { %1343 = vmatprep.mubr.bf16.mxu0 %v2846_v1 }
 0x2c3   : > { %1344 = vmatmul.mubr.bf16.gmra.mrb[20].mxu0 %v1186_v27  ;;  %v2627_v27 = vld [vmem:[%s3435_s10 + $0x84] ss:$8 sps:$4 sm:$0xff]  }
 0x2c4   : > { %1353 = vmatprep.mubr.bf16.mxu0 %v2846_v1 }
 0x2d2   : > { %v2464_v32 = vpop.f32.mrb[4].mxu1 }
 0x2d3   : > { %v1131_v33 = vadd.f32 %v2464_v32, %v2308_v8  ;;  %v1122_v34 = vpop.f32.mrb[5].mxu1  ;;  %v2630_v32 = vld [vmem:[%s3435_s10 + $0x94] ss:$8 sps:$4 sm:$0xff]  }
 0x2d4   : > { %v1123_v35 = vadd.f32 %v2308_v8, %v1122_v34  ;;  %v2465_v36 = vpop.f32.mrb[6].mxu1  ;;  %v2849_v34 = vmov -inf  }
 0x2d5   : > { %v1134_v37 = vadd.f32 %v2465_v36, %v2308_v8  ;;  %v1125_v38 = vpop.f32.mrb[7].mxu1  ;;  %v1175_v41 = vmax.f32 %v1131_v33, 0.0  ;;  %v2628_v33 = vld [vmem:[%s3435_s10 + $0x90] ss:$8 sps:$4 sm:$0xff]   ;;  %1502 = vst [vmem:[#allocation2] sm:$0xf] %v2849_v34 }
 0x2d6   : > { %v1126_v40 = vadd.f32 %v2308_v8, %v1125_v38  ;;  %v1173_v43 = vmax.f32 %v1123_v35, 0.0  ;;  %v2633_v35 = vld [vmem:[%s3435_s10 + $0xa4] ss:$8 sps:$4 sm:$0xff]   ;;  %v2631_v36 = vld [vmem:[%s3435_s10 + $0xa0] ss:$8 sps:$4 sm:$0xff]  }
 0x2d7   : > { %v1176_v42 = vmax.f32 %v1134_v37, 0.0  ;;  %v2636_v37 = vld [vmem:[%s3435_s10 + $0xb4] ss:$8 sps:$4 sm:$0xff]   ;;  %v2634_v38 = vld [vmem:[%s3435_s10 + $0xb0] ss:$8 sps:$4 sm:$0xff]  }
 0x2d8   : > { %v1174_v29 = vmax.f32 %v1126_v40, 0.0  ;;  %v2639_v40 = vld [vmem:[%s3435_s10 + $0xc4] ss:$8 sps:$4 sm:$0xff]   ;;  %v2672_v34 = vld [vmem:[#allocation6 + $0x74] ss:$8 sps:$4 sm:$0xff]  }
 0x2d9   : > { %v1188_v30 = vpack.c.bf16 %v1176_v42, %v1175_v41  ;;  %v2637_v41 = vld [vmem:[%s3435_s10 + $0xc0] ss:$8 sps:$4 sm:$0xff]   ;;  %v2642_v42 = vld [vmem:[%s3435_s10 + $0xd4] ss:$8 sps:$4 sm:$0xff]  }
 0x2da   : > { %v1187_v44 = vpack.c.bf16 %v1174_v29, %v1173_v43  ;;  %v2468_v45 = vpop.f32.mrb[8].mxu1  ;;  %v2640_v43 = vld [vmem:[%s3435_s10 + $0xd0] ss:$8 sps:$4 sm:$0xff]   ;;  %v2645_v29 = vld [vmem:[%s3435_s10 + $0xe4] ss:$8 sps:$4 sm:$0xff]  }
 0x2db   : > { %v1147_v46 = vadd.f32 %v2468_v45, %v2308_v8  ;;  %v1138_v47 = vpop.f32.mrb[9].mxu1  ;;  %v2646_v45 = vld [vmem:[%s3435_s10 + $0xf0] ss:$8 sps:$4 sm:$0xff]  }
 0x2dc   : > { %v1139_v48 = vadd.f32 %v2308_v8, %v1138_v47  ;;  %1354 = vmatmul.mubr.bf16.gmra.mrb[24].mxu0 %v1187_v44  ;;  %v2469_v49 = vpop.f32.mrb[10].mxu1  ;;  %v2648_v44 = vld [vmem:[%s3435_s10 + $0xf4] ss:$8 sps:$4 sm:$0xff]   ;;  %v2651_v47 = vld [vmem:[#allocation6 + $0x4] ss:$8 sps:$4 sm:$0xff]  }
 0x2dd   : > { %v1179_v50 = vmax.f32 %v1147_v46, 0.0  ;;  %v1150_v28 = vadd.f32 %v2469_v49, %v2308_v8  ;;  %v1141_v51 = vpop.f32.mrb[11].mxu1  ;;  %1363 = vmatprep.mubr.bf16.mxu0 %v2846_v1  ;;  %v2649_v46 = vld [vmem:[#allocation6] ss:$8 sps:$4 sm:$0xff]   ;;  %v1209_v49 = vld [vmem:[%s3434_s9] sm:$0x3]  ;;  %2010 = vmatprep.subr.bf16.mxu0 %v2651_v47 }
 0x2de   : > { %v1177_v52 = vmax.f32 %v1139_v48, 0.0  ;;  %v1142_v53 = vadd.f32 %v2308_v8, %v1141_v51  ;;  %v2654_v48 = vld [vmem:[#allocation6 + $0x14] ss:$8 sps:$4 sm:$0xff]   ;;  %2011 = vmatpush1.bf16.msra.mxu0 %v2649_v46  ;;  %v3320_v51 = vrot.slane %v1209_v49, %v3110_v25  ;;  %v2682_v47 = vld [vmem:[#allocation6 + $0xb0] ss:$8 sps:$4 sm:$0xff]  }
 0x2df   : > { %v1180_v54 = vmax.f32 %v1150_v28, 0.0  ;;  %2012 = vmatprep.subr.bf16.mxu0 %v2654_v48  ;;  %v2657_v28 = vld [vmem:[#allocation6 + $0x24] ss:$8 sps:$4 sm:$0xff]  }
 0x2e0   : > { %v1178_v39 = vmax.f32 %v1142_v53, 0.0  ;;  %v2655_v53 = vld [vmem:[#allocation6 + $0x20] ss:$8 sps:$4 sm:$0xff]  }
 0x2e1   : > { %v1190_v55 = vpack.c.bf16 %v1180_v54, %v1179_v50  ;;  %v2652_v50 = vld [vmem:[#allocation6 + $0x10] ss:$8 sps:$4 sm:$0xff]  }
 0x2e2   : > { %v1189_v56 = vpack.c.bf16 %v1178_v39, %v1177_v52  ;;  %v2472_v57 = vpop.f32.mrb[12].mxu1  ;;  %v3323_v52 = vrot.slane %v1209_v49, %v3107_v24  ;;  %2013 = vmatpush1.bf16.msra.mxu0 %v2652_v50  ;;  %v2660_v39 = vld [vmem:[#allocation6 + $0x34] ss:$8 sps:$4 sm:$0xff]  }
 0x2e3   : > { %v1163_v58 = vadd.f32 %v2472_v57, %v2308_v8  ;;  %v1154_v59 = vpop.f32.mrb[13].mxu1  ;;  %2014 = vmatprep.subr.bf16.mxu0 %v2657_v28  ;;  %v2687_v28 = vld [vmem:[#allocation6 + $0xc4] ss:$8 sps:$4 sm:$0xff]  }
 0x2e4   : > { %1364 = vmatmul.mubr.bf16.gmra.mrb[28].mxu0 %v1188_v30  ;;  %v1155_v60 = vadd.f32 %v2308_v8, %v1154_v59  ;;  %v2473_v61 = vpop.f32.mrb[14].mxu1  ;;  %v2643_v30 = vld [vmem:[%s3435_s10 + $0xe0] ss:$8 sps:$4 sm:$0xff]  }
 0x2e5   : > { %v1183_v62 = vmax.f32 %v1163_v58, 0.0  ;;  %1373 = vmatprep.mubr.bf16.mxu0 %v2846_v1  ;;  %v1166_v63 = vadd.f32 %v2473_v61, %v2308_v8  ;;  %v1157_v0 = vpop.f32.mrb[15].mxu1  ;;  %v2658_v61 = vld [vmem:[#allocation6 + $0x30] ss:$8 sps:$4 sm:$0xff]  }
 0x2e6   : > { %v1181_v2 = vmax.f32 %v1155_v60, 0.0  ;;  %v1158_v3 = vadd.f32 %v2308_v8, %v1157_v0  ;;  %v2606_v8 = vld [vmem:[%s3435_s10 + $0x14] ss:$8 sps:$4 sm:$0xff]   ;;  %2015 = vmatpush1.bf16.msra.mxu0 %v2655_v53 }
 0x2e7   : > { %v1184_v4 = vmax.f32 %v1166_v63, 0.0  ;;  %1763 = vmatprep.subr.bf16.mxu1 %v2606_v8  ;;  %2016 = vmatprep.subr.bf16.mxu0 %v2660_v39  ;;  %v2663_v63 = vld [vmem:[#allocation6 + $0x44] ss:$8 sps:$4 sm:$0xff]  }
 0x2e8   : > { %v1182_v5 = vmax.f32 %v1158_v3, 0.0  ;;  %1764 = vmatpush1.bf16.msra.mxu1 %v2604_v11 }
 0x2e9   : > { %v1192_v6 = vpack.c.bf16 %v1184_v4, %v1183_v62 }
 0x2ea   : > { %v1191_v7 = vpack.c.bf16 %v1182_v5, %v1181_v2  ;;  %2017 = vmatpush1.bf16.msra.mxu0 %v2658_v61 }
 0x2eb   : > { %2018 = vmatprep.subr.bf16.mxu0 %v2663_v63 }
 0x2ec   : > { %1374 = vmatmul.mubr.bf16.gmra.mrb[32].mxu0 %v1189_v56 }
 0x2ed   : > { %1383 = vmatprep.mubr.bf16.mxu0 %v2846_v1 }
 0x2f4   : > { %1384 = vmatmul.mubr.bf16.gmra.mrb[36].mxu0 %v1190_v55 }
 0x2f5   : > { %1393 = vmatprep.mubr.bf16.mxu0 %v2846_v1 }
 0x2fc   : > { %1394 = vmatmul.mubr.bf16.gmra.mrb[40].mxu0 %v1191_v7 }
 0x2fd   : > { %1403 = vmatprep.mubr.bf16.mxu0 %v2846_v1  ;;  %v2609_v1 = vld [vmem:[%s3435_s10 + $0x24] ss:$8 sps:$4 sm:$0xff]  }
 0x2fe   : > { %1765 = vmatprep.subr.bf16.mxu1 %v2609_v1 }
 0x2ff   : > { %1766 = vmatpush1.bf16.msra.mxu1 %v2607_v12 }
 0x300   : > { %1767 = vmatprep.subr.bf16.mxu1 %v2612_v13 }
 0x303   : > { %1768 = vmatpush1.bf16.msra.mxu1 %v2610_v14 }
 0x304   : > { %1404 = vmatmul.mubr.bf16.gmra.mrb[44].mxu0 %v1192_v6  ;;  %1769 = vmatprep.subr.bf16.mxu1 %v2615_v15  ;;  %v2661_v6 = vld [vmem:[#allocation6 + $0x40] ss:$8 sps:$4 sm:$0xff]  }
 0x305   : > { %2019 = vmatpush1.bf16.msra.mxu0 %v2661_v6 }
 0x306   : > { %2020 = vmatprep.subr.bf16.mxu0 %v2666_v10 }
 0x307   : > { %1770 = vmatpush1.bf16.msra.mxu1 %v2613_v16  ;;  %v2664_v16 = vld [vmem:[#allocation6 + $0x50] ss:$8 sps:$4 sm:$0xff]  }
 0x308   : > { %1771 = vmatprep.subr.bf16.mxu1 %v2618_v17 }
 0x309   : > { %2021 = vmatpush1.bf16.msra.mxu0 %v2664_v16 }
 0x30b   : > { %1772 = vmatpush1.bf16.msra.mxu1 %v2616_v19 }
 0x30c   : > { %1773 = vmatprep.subr.bf16.mxu1 %v2621_v21  ;;  %v2669_v21 = vld [vmem:[#allocation6 + $0x64] ss:$8 sps:$4 sm:$0xff]  }
 0x30d   : > { %2022 = vmatprep.subr.bf16.mxu0 %v2669_v21 }
 0x30f   : > { %1774 = vmatpush1.bf16.msra.mxu1 %v2619_v22 }
 0x310   : > { %1775 = vmatprep.subr.bf16.mxu1 %v2624_v23 }
 0x313   : > { %1776 = vmatpush1.bf16.msra.mxu1 %v2622_v26 }
 0x314   : > { %1777 = vmatprep.subr.bf16.mxu1 %v2627_v27 }
 0x317   : > { %1778 = vmatpush1.bf16.msra.mxu1 %v2625_v31 }
 0x318   : > { %1779 = vmatprep.subr.bf16.mxu1 %v2630_v32  ;;  %v2667_v32 = vld [vmem:[#allocation6 + $0x60] ss:$8 sps:$4 sm:$0xff]  }
 0x319   : > { %2023 = vmatpush1.bf16.msra.mxu0 %v2667_v32 }
 0x31a   : > { %2024 = vmatprep.subr.bf16.mxu0 %v2672_v34 }
 0x31b   : > { %1780 = vmatpush1.bf16.msra.mxu1 %v2628_v33 }
 0x31c   : > { %1781 = vmatprep.subr.bf16.mxu1 %v2633_v35  ;;  %v2670_v35 = vld [vmem:[#allocation6 + $0x70] ss:$8 sps:$4 sm:$0xff]  }
 0x31d   : > { %2025 = vmatpush1.bf16.msra.mxu0 %v2670_v35 }
 0x31f   : > { %1782 = vmatpush1.bf16.msra.mxu1 %v2631_v36  ;;  %v2675_v36 = vld [vmem:[#allocation6 + $0x84] ss:$8 sps:$4 sm:$0xff]  }
 0x320   : > { %1783 = vmatprep.subr.bf16.mxu1 %v2636_v37  ;;  %v2673_v37 = vld [vmem:[#allocation6 + $0x80] ss:$8 sps:$4 sm:$0xff]   ;;  %2026 = vmatprep.subr.bf16.mxu0 %v2675_v36 }
 0x321   : > { %2027 = vmatpush1.bf16.msra.mxu0 %v2673_v37 }
 0x323   : > { %1784 = vmatpush1.bf16.msra.mxu1 %v2634_v38  ;;  %v2678_v38 = vld [vmem:[#allocation6 + $0x94] ss:$8 sps:$4 sm:$0xff]  }
 0x324   : > { %1785 = vmatprep.subr.bf16.mxu1 %v2639_v40  ;;  %v2676_v40 = vld [vmem:[#allocation6 + $0x90] ss:$8 sps:$4 sm:$0xff]   ;;  %2028 = vmatprep.subr.bf16.mxu0 %v2678_v38 }
 0x325   : > { %2029 = vmatpush1.bf16.msra.mxu0 %v2676_v40 }
 0x327   : > { %1786 = vmatpush1.bf16.msra.mxu1 %v2637_v41  ;;  %v2681_v41 = vld [vmem:[#allocation6 + $0xa4] ss:$8 sps:$4 sm:$0xff]  }
 0x328   : > { %1787 = vmatprep.subr.bf16.mxu1 %v2642_v42  ;;  %v2679_v42 = vld [vmem:[#allocation6 + $0xa0] ss:$8 sps:$4 sm:$0xff]   ;;  %2030 = vmatprep.subr.bf16.mxu0 %v2681_v41 }
 0x329   : > { %2031 = vmatpush1.bf16.msra.mxu0 %v2679_v42 }
 0x32b   : > { %1788 = vmatpush1.bf16.msra.mxu1 %v2640_v43  ;;  %v2684_v43 = vld [vmem:[#allocation6 + $0xb4] ss:$8 sps:$4 sm:$0xff]  }
 0x32c   : > { %1789 = vmatprep.subr.bf16.mxu1 %v2645_v29  ;;  %2032 = vmatprep.subr.bf16.mxu0 %v2684_v43 }
 0x32d   : > { %2033 = vmatpush1.bf16.msra.mxu0 %v2682_v47 }
 0x32e   : > { %2034 = vmatprep.subr.bf16.mxu0 %v2687_v28 }
 0x32f   : > { %1790 = vmatpush1.bf16.msra.mxu1 %v2643_v30 }
 0x330   : > { %1791 = vmatprep.subr.bf16.mxu1 %v2648_v44 }
 0x333   : > { %1792 = vmatpush1.bf16.msra.mxu1 %v2646_v45 }
 0x38e   : > { %v1335_v54 = vpop.f32.mrb[16].mxu0 }
 0x38f   : > { %v1336_v55 = vadd.f32 %v1335_v54, %v3320_v51  ;;  %v1337_v56 = vpop.f32.mrb[17].mxu0 }
 0x390   : > { %v1338_v57 = vadd.f32 %v1337_v56, %v3323_v52  ;;  %v1339_v58 = vpop.f32.mrb[18].mxu0 }
 0x391   : > { %v1340_v59 = vadd.f32 %v1339_v58, %v3320_v51  ;;  %v1341_v60 = vpop.f32.mrb[19].mxu0  ;;  %v1414_v0 = vmax.f32 %v1336_v55, 0.0  ;;  %v2685_v58 = vld [vmem:[#allocation6 + $0xc0] ss:$8 sps:$4 sm:$0xff]  }
 0x392   : > { %v1342_v62 = vadd.f32 %v1341_v60, %v3323_v52  ;;  %v1415_v3 = vmax.f32 %v1338_v57, 0.0  ;;  %v2690_v60 = vld [vmem:[#allocation6 + $0xd4] ss:$8 sps:$4 sm:$0xff]   ;;  %2035 = vmatpush1.bf16.msra.mxu0 %v2685_v58 }
 0x393   : > { %v1416_v2 = vmax.f32 %v1340_v59, 0.0  ;;  %2036 = vmatprep.subr.bf16.mxu0 %v2690_v60 }
 0x394   : > { %v1417_v4 = vmax.f32 %v1342_v62, 0.0 }
 0x395   : > { %v1446_v5 = vmax.f32 %v1414_v0, %v1416_v2 }
 0x396   : > { %v1459_v7 = vmax.f32 %v1415_v3, %v1417_v4  ;;  %v1345_v9 = vpop.f32.mrb[20].mxu0  ;;  %v2688_v4 = vld [vmem:[#allocation6 + $0xd0] ss:$8 sps:$4 sm:$0xff]  }
 0x397   : > { %v1346_v8 = vadd.f32 %v1345_v9, %v3320_v51  ;;  %v1347_v11 = vpop.f32.mrb[21].mxu0  ;;  %2037 = vmatpush1.bf16.msra.mxu0 %v2688_v4 }
 0x398   : > { %v1348_v1 = vadd.f32 %v1347_v11, %v3323_v52  ;;  %v1349_v12 = vpop.f32.mrb[22].mxu0 }
 0x399   : > { %v1418_v13 = vmax.f32 %v1346_v8, 0.0  ;;  %v1350_v14 = vadd.f32 %v1349_v12, %v3320_v51  ;;  %v1351_v15 = vpop.f32.mrb[23].mxu0 }
 0x39a   : > { %v1419_v17 = vmax.f32 %v1348_v1, 0.0  ;;  %v1352_v19 = vadd.f32 %v1351_v15, %v3323_v52 }
 0x39b   : > { %v1447_v22 = vmax.f32 %v1446_v5, %v1418_v13  ;;  %v1420_v23 = vmax.f32 %v1350_v14, 0.0 }
 0x39c   : > { %v1460_v26 = vmax.f32 %v1459_v7, %v1419_v17  ;;  %v1421_v27 = vmax.f32 %v1352_v19, 0.0 }
 0x39d   : > { %v1448_v31 = vmax.f32 %v1447_v22, %v1420_v23 }
 0x39e   : > { %v1461_v33 = vmax.f32 %v1460_v26, %v1421_v27 }
 0x3af   : > { %v1355_v29 = vpop.f32.mrb[24].mxu0 }
 0x3b0   : > { %v1356_v30 = vadd.f32 %v1355_v29, %v3320_v51  ;;  %v1357_v44 = vpop.f32.mrb[25].mxu0 }
 0x3b1   : > { %v1358_v45 = vadd.f32 %v1357_v44, %v3323_v52  ;;  %v1359_v46 = vpop.f32.mrb[26].mxu0 }
 0x3b2   : > { %v1422_v48 = vmax.f32 %v1356_v30, 0.0  ;;  %v1360_v49 = vadd.f32 %v1359_v46, %v3320_v51  ;;  %v1361_v50 = vpop.f32.mrb[27].mxu0 }
 0x3b3   : > { %v1423_v53 = vmax.f32 %v1358_v45, 0.0  ;;  %v1362_v54 = vadd.f32 %v1361_v50, %v3323_v52 }
 0x3b4   : > { %v1449_v39 = vmax.f32 %v1448_v31, %v1422_v48  ;;  %v1424_v55 = vmax.f32 %v1360_v49, 0.0 }
 0x3b5   : > { %v1462_v56 = vmax.f32 %v1461_v33, %v1423_v53  ;;  %v1425_v57 = vmax.f32 %v1362_v54, 0.0 }
 0x3b6   : > { %v1450_v59 = vmax.f32 %v1449_v39, %v1424_v55 }
 0x3b7   : > { %v1463_v61 = vmax.f32 %v1462_v56, %v1425_v57  ;;  %v1365_v62 = vpop.f32.mrb[28].mxu0 }
 0x3b8   : > { %v1366_v63 = vadd.f32 %v1365_v62, %v3320_v51  ;;  %v1367_v0 = vpop.f32.mrb[29].mxu0 }
 0x3b9   : > { %v1368_v2 = vadd.f32 %v1367_v0, %v3323_v52  ;;  %v1369_v3 = vpop.f32.mrb[30].mxu0 }
 0x3ba   : > { %v1426_v5 = vmax.f32 %v1366_v63, 0.0  ;;  %v1370_v6 = vadd.f32 %v1369_v3, %v3320_v51  ;;  %v1371_v7 = vpop.f32.mrb[31].mxu0 }
 0x3bb   : > { %v1427_v9 = vmax.f32 %v1368_v2, 0.0  ;;  %v1372_v10 = vadd.f32 %v1371_v7, %v3323_v52 }
 0x3bc   : > { %v1451_v8 = vmax.f32 %v1450_v59, %v1426_v5  ;;  %v1428_v11 = vmax.f32 %v1370_v6, 0.0 }
 0x3bd   : > { %v1464_v1 = vmax.f32 %v1463_v61, %v1427_v9  ;;  %v1429_v12 = vmax.f32 %v1372_v10, 0.0 }
 0x3be   : > { %v1452_v13 = vmax.f32 %v1451_v8, %v1428_v11 }
 0x3bf   : > { %v1465_v14 = vmax.f32 %v1464_v1, %v1429_v12  ;;  %v1375_v15 = vpop.f32.mrb[32].mxu0 }
 0x3c0   : > { %v1453_v16 = vrot.slane %v1452_v13, 4  ;;  %v1376_v17 = vadd.f32 %v1375_v15, %v3320_v51  ;;  %v1377_v19 = vpop.f32.mrb[33].mxu0 }
 0x3c1   : > { %v1466_v21 = vrot.slane %v1465_v14, 4  ;;  %v1378_v22 = vadd.f32 %v1377_v19, %v3323_v52  ;;  %v1379_v23 = vpop.f32.mrb[34].mxu0 }
 0x3c2   : > { %v1454_v26 = vmax.f32 %v1452_v13, %v1453_v16  ;;  %v1380_v27 = vadd.f32 %v1379_v23, %v3320_v51  ;;  %v1381_v31 = vpop.f32.mrb[35].mxu0  ;;  %v1430_v35 = vmax.f32 %v1376_v17, 0.0 }
 0x3c3   : > { %v1467_v32 = vmax.f32 %v1465_v14, %v1466_v21  ;;  %v1382_v33 = vadd.f32 %v1381_v31, %v3323_v52  ;;  %v1431_v38 = vmax.f32 %v1378_v22, 0.0 }
 0x3c4   : > { %v1455_v34 = vrot.slane %v1454_v26, 2  ;;  %v1432_v36 = vmax.f32 %v1380_v27, 0.0 }
 0x3c5   : > { %v1468_v37 = vrot.slane %v1467_v32, 2  ;;  %v1433_v40 = vmax.f32 %v1382_v33, 0.0 }
 0x3c6   : > { %v1456_v41 = vmax.f32 %v1454_v26, %v1455_v34  ;;  %v1472_v42 = vmax.f32 %v1430_v35, %v1432_v36 }
 0x3c7   : > { %v1469_v43 = vmax.f32 %v1467_v32, %v1468_v37  ;;  %v1485_v29 = vmax.f32 %v1431_v38, %v1433_v40  ;;  %v1385_v30 = vpop.f32.mrb[36].mxu0 }
 0x3c8   : > { %v1457_v44 = vrot.slane %v1456_v41, 1  ;;  %v1386_v45 = vadd.f32 %v1385_v30, %v3320_v51  ;;  %v1387_v46 = vpop.f32.mrb[37].mxu0  ;;  %v2850_v30 = vmov 1983009808  }
 0x3c9   : > { %v1470_v47 = vrot.slane %v1469_v43, 1  ;;  %v1388_v48 = vadd.f32 %v1387_v46, %v3323_v52  ;;  %v1389_v49 = vpop.f32.mrb[38].mxu0 }
 0x3ca   : > { %v3347_v50 = vmax.f32 %v1456_v41, %v1457_v44  ;;  %v1434_v28 = vmax.f32 %v1386_v45, 0.0  ;;  %v1390_v53 = vadd.f32 %v1389_v49, %v3320_v51  ;;  %v1391_v54 = vpop.f32.mrb[39].mxu0  ;;  %v1510_v44 = vunpack.c.l.s4 %v2850_v30 }
 0x3cb   : > { %v1471_v39 = vmax.f32 %v1469_v43, %v1470_v47  ;;  %v1435_v55 = vmax.f32 %v1388_v48, 0.0  ;;  %v1392_v56 = vadd.f32 %v1391_v54, %v3323_v52 }
 0x3cc   : > { %v1473_v57 = vmax.f32 %v1472_v42, %v1434_v28  ;;  %v1436_v58 = vmax.f32 %v1390_v53, 0.0  ;;  %v1511_v48 = vunpack.c.0.s8 %v1510_v44 }
 0x3cd   : > { %v1508_v59 = vcombine.low %v3347_v50, %v1471_v39  ;;  %v1486_v60 = vmax.f32 %v1485_v29, %v1435_v55  ;;  %v1437_v61 = vmax.f32 %v1392_v56, 0.0 }
 0x3ce   : > { %v1474_v62 = vmax.f32 %v1473_v57, %v1436_v58  ;;  %v1514_v28 = vsub.s32 %v1511_v48, %v3100_v20  ;;  %v1503_v57 = vld [vmem:[#allocation2] sm:$0xf] }
 0x3cf   : > { %v1487_v63 = vmax.f32 %v1486_v60, %v1437_v61  ;;  %v1395_v0 = vpop.f32.mrb[40].mxu0 }
 0x3d0   : > { %v1396_v2 = vadd.f32 %v1395_v0, %v3320_v51  ;;  %v1397_v3 = vpop.f32.mrb[41].mxu0  ;;  %v1515_v39 = vrot.slane %v1508_v59, %v1514_v28  ;;  %v2696_v59 = vld [vmem:[#allocation6 + $0xf4] ss:$8 sps:$4 sm:$0xff]  }
 0x3d1   : > { %v1398_v4 = vadd.f32 %v1397_v3, %v3323_v52  ;;  %v1399_v5 = vpop.f32.mrb[42].mxu0 }
 0x3d2   : > { %v1438_v6 = vmax.f32 %v1396_v2, 0.0  ;;  %v1400_v7 = vadd.f32 %v1399_v5, %v3320_v51  ;;  %v1401_v9 = vpop.f32.mrb[43].mxu0  ;;  %v2691_v5 = vld [vmem:[#allocation6 + $0xe0] ss:$8 sps:$4 sm:$0xff]  }
 0x3d3   : > { %v1439_v10 = vmax.f32 %v1398_v4, 0.0  ;;  %v1402_v8 = vadd.f32 %v1401_v9, %v3323_v52  ;;  %v2693_v4 = vld [vmem:[#allocation6 + $0xe4] ss:$8 sps:$4 sm:$0xff]  }
 0x3d4   : > { %v1475_v11 = vmax.f32 %v1474_v62, %v1438_v6  ;;  %v1440_v1 = vmax.f32 %v1400_v7, 0.0  ;;  %2038 = vmatprep.subr.bf16.mxu0 %v2693_v4  ;;  %v2694_v6 = vld [vmem:[#allocation6 + $0xf0] ss:$8 sps:$4 sm:$0xff]   ;;  %v1589_v7 = vld [vmem:[%s3436_s11] sm:$0x3] }
 0x3d5   : > { %v1488_v12 = vmax.f32 %v1487_v63, %v1439_v10  ;;  %v1441_v13 = vmax.f32 %v1402_v8, 0.0  ;;  %2039 = vmatpush1.bf16.msra.mxu0 %v2691_v5  ;;  %v1594_v9 = vrot.slane %v1589_v7, %v3110_v25  ;;  %v1598_v10 = vrot.slane %v1589_v7, %v3107_v24 }
 0x3d6   : > { %v1476_v14 = vmax.f32 %v1475_v11, %v1440_v1  ;;  %2040 = vmatprep.subr.bf16.mxu0 %v2696_v59 }
 0x3d7   : > { %v1489_v15 = vmax.f32 %v1488_v12, %v1441_v13  ;;  %v1405_v16 = vpop.f32.mrb[44].mxu0 }
 0x3d8   : > { %v1406_v17 = vadd.f32 %v1405_v16, %v3320_v51  ;;  %v1407_v19 = vpop.f32.mrb[45].mxu0 }
 0x3d9   : > { %v1408_v21 = vadd.f32 %v1407_v19, %v3323_v52  ;;  %v1409_v22 = vpop.f32.mrb[46].mxu0  ;;  %2041 = vmatpush1.bf16.msra.mxu0 %v2694_v6 }
 0x3da   : > { %v1442_v23 = vmax.f32 %v1406_v17, 0.0  ;;  %v1410_v26 = vadd.f32 %v1409_v22, %v3320_v51  ;;  %v1411_v27 = vpop.f32.mrb[47].mxu0 }
 0x3db   : > { %v1443_v31 = vmax.f32 %v1408_v21, 0.0  ;;  %v1412_v32 = vadd.f32 %v1411_v27, %v3323_v52  ;;  %v1838_v21 = vld [vmem:[%s3475_s20] sm:$0x3] }
 0x3dc   : > { %v1477_v33 = vmax.f32 %v1476_v14, %v1442_v23  ;;  %v1444_v34 = vmax.f32 %v1410_v26, 0.0  ;;  %v1843_v22 = vrot.slane %v1838_v21, %v3110_v25  ;;  %v1847_v23 = vrot.slane %v1838_v21, %v3107_v24 }
 0x3dd   : > { %v1490_v35 = vmax.f32 %v1489_v15, %v1443_v31  ;;  %v1445_v36 = vmax.f32 %v1412_v32, 0.0  ;;  %v2851_v26 = vmov 1966171168  }
 0x3de   : > { %v1478_v37 = vmax.f32 %v1477_v33, %v1444_v34  ;;  %v2063_v27 = vunpack.c.l.s4 %v2851_v26 }
 0x3df   : > { %v1491_v38 = vmax.f32 %v1490_v35, %v1445_v36 }
 0x3e0   : > { %v1479_v40 = vrot.slane %v1478_v37, 4  ;;  %v2064_v35 = vunpack.c.0.s8 %v2063_v27 }
 0x3e1   : > { %v1492_v41 = vrot.slane %v1491_v38, 4 }
 0x3e2   : > { %v1480_v42 = vmax.f32 %v1478_v37, %v1479_v40  ;;  %v2067_v25 = vsub.s32 %v2064_v35, %v3100_v20 }
 0x3e3   : > { %v1493_v43 = vmax.f32 %v1491_v38, %v1492_v41 }
 0x3e4   : > { %v1481_v29 = vrot.slane %v1480_v42, 2 }
 0x3e5   : > { %v1494_v45 = vrot.slane %v1493_v43, 2 }
 0x3e6   : > { %v1482_v46 = vmax.f32 %v1480_v42, %v1481_v29 }
 0x3e7   : > { %v1495_v51 = vmax.f32 %v1493_v43, %v1494_v45 }
 0x3e8   : > { %v1483_v47 = vrot.slane %v1482_v46, 1 }
 0x3e9   : > { %v1496_v49 = vrot.slane %v1495_v51, 1 }
 0x3ea   : > { %v1484_v52 = vmax.f32 %v1482_v46, %v1483_v47 }
 0x3eb   : > { %v1497_v50 = vmax.f32 %v1495_v51, %v1496_v49 }
 0x3ed   : > { %v1516_v53 = vcombine.low %v1484_v52, %v1497_v50 }
 0x3ef   : > { %v1523_v54 = vrot.slane %v1516_v53, %v1514_v28 }
 0x3f1   : > { %v1528_v55 = vrot.slane %v1523_v54, 7 }
 0x3f3   : > { %v1530_v56 = vsel %vm1529_vm4, %v1528_v55, %v1515_v39 }
 0x3f4   : > { %v1532_v58 = vsel %vm1531_vm5, %v1528_v55, %v1530_v56 }
 0x3f5   : > { %v1534_v60 = vsel %vm1533_vm6, %v1528_v55, %v1532_v58 }
 0x3f6   : > { %v1536_v61 = vsel %vm1535_vm7, %v1528_v55, %v1534_v60 }
 0x3f7   : > { %v1538_v62 = vmax.f32 %v1503_v57, %v1536_v61 }
 0x3f9   : > { %1539 = vst [vmem:[#allocation2] sm:$0xf] %v1538_v62 }
 0x400   : > { %v2337_v63 = vld.sshfl [vmem:[#allocation2] sm:$0x33 pattern:$0x76325410] }
 0x401   : > { %v1552_v0 = vcombine.high %v2337_v63, %v2337_v63  ;;  %v1555_v3 = vpack.c.bf16 %v2337_v63, %v2337_v63 }
 0x403   : > { %v1556_v2 = vpack.c.bf16 %v1552_v0, %v1552_v0 }
 0x405   : > { %1793 = vmatprep.mubr.bf16.mxu1 %v1556_v2 }
 0x406   : > { %1794 = vmatmul.mubr.bf16.vlgmr.msra.gmra.mrb[16].mxu1 %v1555_v3 }
 0x4d9   : > { %v1795_v8 = vpop.f32.mrb[16].mxu1 }
 0x4da   : > { %v1796_v11 = vadd.f32 %v1795_v8, %v1594_v9  ;;  %v1797_v1 = vpop.f32.mrb[17].mxu1 }
 0x4db   : > { %v1798_v12 = vadd.f32 %v1797_v1, %v1598_v10  ;;  %v1799_v13 = vpop.f32.mrb[18].mxu1 }
 0x4dc   : > { %v1802_v14 = vmax.f32 %v1796_v11, 0.0  ;;  %v1800_v15 = vpop.f32.mrb[19].mxu1 }
 0x4dd   : > { %v1803_v16 = vmax.f32 %v1798_v12, 0.0 }
 0x4de   : > { %v1804_v19 = vpack.c.bf16 %v1802_v14, %v1802_v14 }
 0x4df   : > { %v1805_v17 = vpack.c.bf16 %v1803_v16, %v1803_v16 }
 0x4e1   : > { %2042 = vmatprep.mubr.bf16.mxu0 %v1805_v17 }
 0x4e2   : > { %2043 = vmatmul.mubr.bf16.vlgmr.msra.gmra.mrb[48].mxu0 %v1804_v19 }
 0x5b5   : > { %v2044_v31 = vpop.f32.mrb[48].mxu0 }
 0x5b6   : > { %v2045_v32 = vadd.f32 %v2044_v31, %v1843_v22  ;;  %v2046_v33 = vpop.f32.mrb[49].mxu0 }
 0x5b7   : > { %v2047_v34 = vadd.f32 %v2046_v33, %v1847_v23  ;;  %v2048_v36 = vpop.f32.mrb[50].mxu0 }
 0x5b8   : > { %v2053_v37 = vrot.slane %v2045_v32, 1  ;;  %v2049_v38 = vpop.f32.mrb[51].mxu0 }
 0x5b9   : > { %v2054_v40 = vrot.slane %v2047_v34, 1 }
 0x5ba   : > { %v2057_v41 = vsub.f32 %v2045_v32, %v2053_v37 }
 0x5bb   : > { %v2058_v42 = vsub.f32 %v2047_v34, %v2054_v40 }
 0x5bd   : > { %v2061_v24 = vcombine.low %v2057_v41, %v2058_v42 }
 0x5bf   : > { %v2068_v43 = vrot.slane %v2061_v24, %v2067_v25 }
 0x5c1   : > { %v2075_v29 = vrot.slane %v2068_v43, %v2067_v25 }
 0x5c3   : > { %2081 = vst.msk [vmem:[%s604_s27] sm:$0x3] %vm2079_vm8, %v2075_v29 }
 0x5c4   : > { %2766 = shalt.err (!%p2763_p6)
}
 0x5c5   : > { %s2767_s15 = scalar_lea.hbm %s3378_s17, 32  ;;  %s2771_s16 = scalar_lea.hbm %s3477_s28, 64 }
 0x5c6   : > { %p2768_p7 = scmp.ne.s32.totalorder %s3378_s17, %s2767_s15  ;;  %p2772_p0 = scmp.lt.u32.totalorder %s3378_s17, %s3477_s28 }
 0x5c7   : > { %p2773_p4 = scmp.lt.u32.totalorder %s2771_s16, %s2767_s15  ;;  %p2775_p13 = scmp.lt.u32.totalorder %s2767_s15, %s3378_s17 }
 0x5c8   : > { %p2769_p9 = pnand %p2768_p7, %p3478_p8 }
 0x5c9   : > { %p2774_p1 = por %p2773_p4, %p2772_p0 }
 0x5ca   : > { %p2770_p12 = pneg %p2769_p9 }
 0x5cb   : > { %p2776_p10 = por %p2775_p13, %p2774_p1 }
 0x5cd   : > { %p2777_p11 = pnand %p2776_p10, %p2770_p12 }
 0x5cf   : > { %2780 = shalt.err (!%p2777_p11)
}
 0x5d0   : > { %2482 = dma.vmem_to_hbm [thread:$0]  (%p3478_p8), %s3380_s29, 32, %s3378_s17, %s2092_s23  }
 0x5d1 PF: > { %s3479_s13 = sld [smem:[#allocation16_spill]]  ;;  %s3480_s19 = sld [smem:[#allocation12_spill]] }
 0x5d2   : > { %s3481_s18 = sld [smem:[#allocation19_spill]] }
 0x5d7   : > { %p2499_p2 = scmp.ge.s32.totalorder %s3479_s13, 2  ;;  %s2134_s21 = sand.u32 1, %s3480_s19  }
 0x5d8   : > { %p3482_p3 = scmp.ne.s32.totalorder %s3481_s18, 0  ;;  %s2135_s30 = scalar_lea.sflag [#allocation5], %s2134_s21 }
 0x5da   : > { %p2492_p5 = pnand %p2499_p2, %p3482_p3 }
 0x5dc   : > { %2814 = dma.done.wait (!%p2492_p5), %s2135_s30, 32  }
 0x5dd   : > { %2816 = vsyncadd (!%p2492_p5), %s2135_s30, 4294967264  ;;  %s31_s23 = sadd.s32 1, %s3479_s13   ;;  %s3483_s18 = sld [smem:[#allocation13_spill]] }
 0x5de   : > { %p28_p6 = scmp.ge.s32.totalorder %s31_s23, 4   ;;  %s3484_s19 = sld [smem:[#allocation14_spill]] }
 0x5df   : > { %s3485_s20 = sld [smem:[#allocation20_spill]]  ;;  %s3486_s21 = sld [smem:[#allocation15_spill]] }
 0x5e0   : > { %s3487_s22 = sld [smem:[#allocation17_spill]]  ;;  %30 = sbr.rel (!%p28_p6) target bundleno = 9 (0x9), region = 149 }
 0x5e7   :  { %2140 = vsyncpa [#allocation4], 1 }
 0x5e8   :  { %2142 = vsyncpa [#allocation4 + $0x1], 1 }
 0x5e9   :  { %2143 = vsyncpa [#allocation7], 1 }
 0x5ea   :  { %2144 = vsyncpa [#allocation5], 1 }
 0x5eb   :  { %2146 = vsyncpa [#allocation5 + $0x1], 1 }

</bundles_post_ra>
